<compile_context>
chip_gen: v5e
topology: v5e:2x2
jax: 0.10.0
libtpu: 0.0.40
codegen_flags: <defaults>
</compile_context>

<pallas_src>
import math

import jax
import jax.numpy as jnp
from jax.experimental import pallas as pl
from jax.experimental.pallas import tpu as pltpu

# ----------------------------- small ViT config ------------------------------
BATCH = 2
CHANNELS = 3            # ViT pixel inputs are 3-channel
IMAGE = 16
PATCH = 8
HIDDEN = 32
HEADS = 2
HEAD_DIM = HIDDEN // HEADS
LAYERS = 2
INTERMEDIATE = 4 * HIDDEN          # 128 (one full 128-lane tile)
LORA_R = 8
LORA_ALPHA = 16
LORA_SCALE = LORA_ALPHA / LORA_R   # PEFT scaling = alpha / r
NUM_PATCHES = (IMAGE // PATCH) ** 2
SEQ = NUM_PATCHES + 1              # +1 for [CLS]
TOKENS = BATCH * SEQ               # batch-flattened row count (CLS rows first)
CPP = CHANNELS * PATCH * PATCH
EPS = 1e-12                        # ViT layer_norm_eps

_VMEM = pl.BlockSpec(memory_space=pltpu.MemorySpace.VMEM)


# --------------------------------- kernel ------------------------------------
def _layernorm(x, g, b):
    mu = jnp.mean(x, axis=-1, keepdims=True)
    var = jnp.mean(jnp.square(x - mu), axis=-1, keepdims=True)
    return (x - mu) * jax.lax.rsqrt(var + EPS) * g + b


def fused_vit_kernel(
    pext_ref,     # (TOKENS, CPP) bf16   patches; rows 0..B-1 are zero (CLS slots)
    embw_ref,     # (CPP, D)      bf16   patch-embedding weight
    base_ref,     # (TOKENS, D)   f32    cls/pos/patch-bias additive base
    bias_ref,     # (TOKENS, TOKENS) f32 block-diagonal additive attention mask
    wqkv_ref,     # (L, D, 3D)    bf16   [ Wq(lora+scale folded) | Wk | Wv(lora) ]
    wo_ref,       # (L, D, D)     bf16   output projection (own lane-0-aligned slab)
    w1_ref,       # (L, D, 4D)    bf16   MLP up
    w2_ref,       # (L, 4D, D)    bf16   MLP down
    lvec_ref,     # (L, 8, 128)   f32    per-layer LN gammas/betas + biases (padded)
    hw1_ref,      # (D, 256)      bf16
    hw2_ref,      # (256, 128)    bf16
    hw3_ref,      # (128, 128)    bf16   head_w3 zero-padded to 128 output lanes
    hvec_ref,     # (4, 256)      f32    [ln_f_g|ln_f_b], head_b1, head_b2, head_b3(pad)
    o_ref,        # (B, 128)      f32    lane-dense output (cols 0:3 are real)
):
    D = HIDDEN
    T = TOKENS

    # ---- embeddings: (zero-padded patches) @ W_patch + (cls/pos/bias) base ----
    h = jnp.dot(pext_ref[...], embw_ref[...],
                preferred_element_type=jnp.float32) + base_ref[...]      # (T, D) f32

    attn_bias = bias_ref[...]                                            # (T, T) f32

    # ---- encoder layers (fully unrolled; hidden state stays in vregs) --------
    for l in range(LAYERS):
        ln1_g = lvec_ref[l, 0:1, 0:D]
        ln1_b = lvec_ref[l, 1:2, 0:D]
        ln2_g = lvec_ref[l, 2:3, 0:D]
        ln2_b = lvec_ref[l, 3:4, 0:D]
        bqkv = lvec_ref[l, 4:5, 0:3 * D]
        bo = lvec_ref[l, 5:6, 0:D]
        b1 = lvec_ref[l, 6:7, 0:INTERMEDIATE]
        b2 = lvec_ref[l, 7:8, 0:D]

        hn = _layernorm(h, ln1_g, ln1_b)                       # layernorm_before (f32)
        qkv = jnp.dot(hn.astype(jnp.bfloat16), wqkv_ref[l],
                      preferred_element_type=jnp.float32) + bqkv         # (T, 3D) f32

        # attention over the flattened batch rows with a block-diagonal mask;
        # the two head contexts are lane-concatenated and hit Wo in ONE matmul.
        ctx_parts = []
        for hd in range(HEADS):
            c0 = hd * HEAD_DIM
            qh = qkv[:, c0:c0 + HEAD_DIM].astype(jnp.bfloat16)       # scale pre-folded
            kh = qkv[:, D + c0:D + c0 + HEAD_DIM].astype(jnp.bfloat16)
            vh = qkv[:, 2 * D + c0:2 * D + c0 + HEAD_DIM].astype(jnp.bfloat16)
            s = jax.lax.dot_general(
                qh, kh, (((1,), (1,)), ((), ())),
                preferred_element_type=jnp.float32) + attn_bias          # f32
            s = s - jnp.max(s, axis=-1, keepdims=True)
            p = jnp.exp(s)
            p = p * pl.reciprocal(jnp.sum(p, axis=-1, keepdims=True), approx=True)
            ctx_parts.append(
                jnp.dot(p.astype(jnp.bfloat16), vh,
                        preferred_element_type=jnp.float32))             # (T, HD) f32
        ctx = jnp.concatenate(ctx_parts, axis=-1)                        # (T, D) f32
        attn_out = jnp.dot(ctx.astype(jnp.bfloat16), wo_ref[l],
                           preferred_element_type=jnp.float32) + bo      # (T, D) f32

        x1 = h + attn_out                                      # residual 1 (f32)

        h2 = _layernorm(x1, ln2_g, ln2_b)                      # layernorm_after (f32)
        # TODO(synk): HF ViT uses exact (erf) GELU; tanh approximation kept here
        # for Mosaic-safe lowering.
        mid = jax.nn.gelu(
            jnp.dot(h2.astype(jnp.bfloat16), w1_ref[l],
                    preferred_element_type=jnp.float32) + b1,
            approximate=True)                                            # (T, 4D) f32
        mlp = jnp.dot(mid.astype(jnp.bfloat16), w2_ref[l],
                      preferred_element_type=jnp.float32) + b2
        h = x1 + mlp                                           # residual 2 (f32)

    # ---- final LN on the CLS rows (rows 0..B-1) + regression head -------------
    cls_tok = h[0:BATCH, :]                                    # free static row slice

    ln_f_g = hvec_ref[0:1, 0:D]
    ln_f_b = hvec_ref[0:1, D:2 * D]
    hb1 = hvec_ref[1:2, 0:256]
    hb2 = hvec_ref[2:3, 0:128]
    hb3 = hvec_ref[3:4, 0:128]

    z = _layernorm(cls_tok, ln_f_g, ln_f_b)
    z = jnp.maximum(
        jnp.dot(z.astype(jnp.bfloat16), hw1_ref[...],
                preferred_element_type=jnp.float32) + hb1, 0.0)
    z = jnp.maximum(
        jnp.dot(z.astype(jnp.bfloat16), hw2_ref[...],
                preferred_element_type=jnp.float32) + hb2, 0.0)
    o_ref[...] = (
        jnp.dot(z.astype(jnp.bfloat16), hw3_ref[...],
                preferred_element_type=jnp.float32) + hb3)               # (B, 128)


def run_fused(p_ext, packed):
    args = (p_ext, packed["emb_w"], packed["base"], packed["bias"],
            packed["wqkv"], packed["wo"], packed["w1"], packed["w2"],
            packed["lvec"],
            packed["head_w1"], packed["head_w2"], packed["head_w3"],
            packed["head_vec"])
    return pl.pallas_call(
        fused_vit_kernel,
        out_shape=jax.ShapeDtypeStruct((BATCH, 128), jnp.float32),
        in_specs=[_VMEM] * len(args),
        out_specs=_VMEM,
    )(*args)


# ------------------------------ parameter init --------------------------------
def init_params(key):
    keys = iter(jax.random.split(key, 64))

    def nrm(shape, scale=0.02):
        return scale * jax.random.normal(next(keys), shape, dtype=jnp.float32)

    params = {
        # conv2d weight kept in PyTorch (D, C, P, P) layout; reshaped in packing
        "patch_w": nrm((HIDDEN, CHANNELS, PATCH, PATCH)),
        "patch_b": nrm((HIDDEN,)),
        "cls": nrm((1, 1, HIDDEN)),
        "pos": nrm((1, SEQ, HIDDEN)),
        "layers": [],
        "ln_f_g": jnp.ones((HIDDEN,), jnp.float32),
        "ln_f_b": jnp.zeros((HIDDEN,), jnp.float32),
        "head_w1": nrm((HIDDEN, 256)),
        "head_b1": nrm((256,)),
        "head_w2": nrm((256, 128)),
        "head_b2": nrm((128,)),
        "head_w3": nrm((128, 3)),
        "head_b3": nrm((3,)),
    }
    for _ in range(LAYERS):
        lp = dict(
            ln1_g=jnp.ones((HIDDEN,), jnp.float32),
            ln1_b=jnp.zeros((HIDDEN,), jnp.float32),
            wq=nrm((HIDDEN, HIDDEN)), bq=nrm((HIDDEN,)),
            laq=nrm((HIDDEN, LORA_R)), lbq=nrm((LORA_R, HIDDEN)),
            wk=nrm((HIDDEN, HIDDEN)), bk=nrm((HIDDEN,)),
            wv=nrm((HIDDEN, HIDDEN)), bv=nrm((HIDDEN,)),
            lav=nrm((HIDDEN, LORA_R)), lbv=nrm((LORA_R, HIDDEN)),
            wo=nrm((HIDDEN, HIDDEN)), bo=nrm((HIDDEN,)),
            ln2_g=jnp.ones((HIDDEN,), jnp.float32),
            ln2_b=jnp.zeros((HIDDEN,), jnp.float32),
            w1=nrm((HIDDEN, INTERMEDIATE)), b1=nrm((INTERMEDIATE,)),
            w2=nrm((INTERMEDIATE, HIDDEN)), b2=nrm((HIDDEN,)),
        )
        params["layers"].append(lp)
    return params


# ------------------ one-time packing (outside the jitted forward) --------------
def prepare_params(params):
    D = HIDDEN
    scale = 1.0 / math.sqrt(HEAD_DIM)

    def pad_row(v, n=128):
        return jnp.pad(v, (0, n - v.shape[0]))

    # patch embedding weight (C*P*P, D) in bf16 — transpose + cast done once
    emb_w = params["patch_w"].reshape(D, -1).T.astype(jnp.bfloat16)

    # additive base for the embedded tokens in the CLS-first layout:
    #   rows 0..B-1        -> cls + pos[0]
    #   rows B + b*NP + p  -> patch_bias + pos[1+p]
    pos = params["pos"][0]                                   # (S, D)
    cls_base = (params["cls"][0, 0] + pos[0])[None, :]       # (1, D)
    patch_base = pos[1:] + params["patch_b"][None, :]        # (NP, D)
    base = jnp.concatenate(
        [jnp.tile(cls_base, (BATCH, 1)), jnp.tile(patch_base, (BATCH, 1))],
        axis=0).astype(jnp.float32)                          # (T, D)

    # block-diagonal attention bias for the CLS-first flattened layout (f32)
    row = jnp.arange(TOKENS)
    seq_id = jnp.where(row < BATCH, row, (row - BATCH) // NUM_PATCHES)
    attn_bias = jnp.where(seq_id[:, None] == seq_id[None, :],
                          0.0, -1e30).astype(jnp.float32)    # (T, T)

    wqkv_l, wo_l, w1_l, w2_l, lvecs = [], [], [], [], []
    for lp in params["layers"]:
        # fold LoRA into query / value (inference-only, exact);
        # fold 1/sqrt(head_dim) attention scale into Wq and bq.
        wq_eff = (lp["wq"] + LORA_SCALE * (lp["laq"] @ lp["lbq"])) * scale
        wv_eff = lp["wv"] + LORA_SCALE * (lp["lav"] @ lp["lbv"])
        wqkv_l.append(jnp.concatenate([wq_eff, lp["wk"], wv_eff], axis=1))  # (D, 3D)
        wo_l.append(lp["wo"])
        w1_l.append(lp["w1"])
        w2_l.append(lp["w2"])
        bqkv = jnp.concatenate([lp["bq"] * scale, lp["bk"], lp["bv"]])
        lvecs.append(jnp.stack([
            pad_row(lp["ln1_g"]), pad_row(lp["ln1_b"]),
            pad_row(lp["ln2_g"]), pad_row(lp["ln2_b"]),
            pad_row(bqkv), pad_row(lp["bo"]),
            pad_row(lp["b1"]), pad_row(lp["b2"])]))                         # (8, 128)

    # lane-dense regression output: pad W3/b3 to 128 output lanes (zeros)
    head_w3 = jnp.zeros((128, 128), jnp.float32).at[:, 0:3].set(params["head_w3"])
    head_vec = jnp.stack([
        pad_row(jnp.concatenate([params["ln_f_g"], params["ln_f_b"]]), 256),
        pad_row(params["head_b1"], 256),
        pad_row(params["head_b2"], 256),
        pad_row(pad_row(params["head_b3"], 128), 256)])                     # (4, 256)

    return dict(
        emb_w=emb_w, base=base, bias=attn_bias,
        wqkv=jnp.stack(wqkv_l).astype(jnp.bfloat16),
        wo=jnp.stack(wo_l).astype(jnp.bfloat16),
        w1=jnp.stack(w1_l).astype(jnp.bfloat16),
        w2=jnp.stack(w2_l).astype(jnp.bfloat16),
        lvec=jnp.stack(lvecs).astype(jnp.float32),
        head_w1=params["head_w1"].astype(jnp.bfloat16),
        head_w2=params["head_w2"].astype(jnp.bfloat16),
        head_w3=head_w3.astype(jnp.bfloat16),
        head_vec=head_vec.astype(jnp.float32))


# --------------------------------- forward ------------------------------------
@jax.jit
def vit_for_regression(x, packed):
    # x is NCHW (B, C, H, W) float32, like PyTorch pixel_values.
    B = x.shape[0]
    hp = IMAGE // PATCH
    # im2col matching Conv2d(stride=patch): patch vector ordered (c, ph, pw)
    p = x.reshape(B, CHANNELS, hp, PATCH, hp, PATCH)
    p = p.transpose(0, 2, 4, 1, 3, 5).reshape(B * NUM_PATCHES, CPP)
    # CLS-first layout: B zero rows (CLS slots), then batch-major patch rows
    p_ext = jnp.concatenate([jnp.zeros((B, CPP), x.dtype), p],
                            axis=0).astype(jnp.bfloat16)     # (T, CPP) bf16
    out = run_fused(p_ext, packed)                           # (B, 128) lane-dense
    return out[:, :3]                                        # (B, 3)


if __name__ == "__main__":
    key = jax.random.PRNGKey(0)
    kx, kp = jax.random.split(key)
    x = jax.random.normal(kx, (BATCH, CHANNELS, IMAGE, IMAGE), dtype=jnp.float32)
    params = init_params(kp)
    packed = prepare_params(params)      # once, outside the jitted forward

    out = vit_for_regression(x, packed)
    out = jax.block_until_ready(out)
    assert out.shape == (BATCH, 3) and out.dtype == jnp.float32
    print("KERNEL_OK")
</pallas_src>

<mosaic_0001>
module attributes {stable_mosaic.version = 11 : i64} {
  func.func @fused_vit_kernel(%arg0: memref<10x192xbf16, #tpu.memory_space<vmem>>, %arg1: memref<192x32xbf16, #tpu.memory_space<vmem>>, %arg2: memref<10x32xf32, #tpu.memory_space<vmem>>, %arg3: memref<10x10xf32, #tpu.memory_space<vmem>>, %arg4: memref<2x32x96xbf16, #tpu.memory_space<vmem>>, %arg5: memref<2x32x32xbf16, #tpu.memory_space<vmem>>, %arg6: memref<2x32x128xbf16, #tpu.memory_space<vmem>>, %arg7: memref<2x128x32xbf16, #tpu.memory_space<vmem>>, %arg8: memref<2x8x128xf32, #tpu.memory_space<vmem>>, %arg9: memref<32x256xbf16, #tpu.memory_space<vmem>>, %arg10: memref<256x128xbf16, #tpu.memory_space<vmem>>, %arg11: memref<128x128xbf16, #tpu.memory_space<vmem>>, %arg12: memref<4x256xf32, #tpu.memory_space<vmem>>, %arg13: memref<2x128xf32, #tpu.memory_space<vmem>>) attributes {dimension_semantics = [], scalar_prefetch = 0 : i64, scratch_operands = 0 : i64, tpu.core_type = #tpu.core_type<tc>} {
    %c0 = arith.constant 0 : index
    %c0_0 = arith.constant 0 : index
    %0 = vector.load %arg0[%c0, %c0_0] : memref<10x192xbf16, #tpu.memory_space<vmem>>, vector<10x192xbf16>
    %c0_1 = arith.constant 0 : index
    %c0_2 = arith.constant 0 : index
    %1 = vector.load %arg1[%c0_1, %c0_2] : memref<192x32xbf16, #tpu.memory_space<vmem>>, vector<192x32xbf16>
    %cst = arith.constant dense<0.000000e+00> : vector<10x32xf32>
    %2 = tpu.matmul %0, %1, %cst {dimension_numbers = #tpu.dot_dimension_numbers<[1], [0], [0], [1], [0, 0, 1, 1], [], []>} : vector<10x192xbf16>, vector<192x32xbf16>, vector<10x32xf32> -> vector<10x32xf32>
    %c0_3 = arith.constant 0 : index
    %c0_4 = arith.constant 0 : index
    %3 = vector.load %arg2[%c0_3, %c0_4] : memref<10x32xf32, #tpu.memory_space<vmem>>, vector<10x32xf32>
    %4 = arith.addf %2, %3 : vector<10x32xf32>
    %c0_5 = arith.constant 0 : index
    %c0_6 = arith.constant 0 : index
    %5 = vector.load %arg3[%c0_5, %c0_6] : memref<10x10xf32, #tpu.memory_space<vmem>>, vector<10x10xf32>
    %c0_7 = arith.constant 0 : index
    %c0_8 = arith.constant 0 : index
    %c0_9 = arith.constant 0 : index
    %6 = vector.load %arg8[%c0_7, %c0_8, %c0_9] : memref<2x8x128xf32, #tpu.memory_space<vmem>>, vector<1x1x32xf32>
    %7 = vector.shape_cast %6 : vector<1x1x32xf32> to vector<1x32xf32>
    %c0_10 = arith.constant 0 : index
    %c1 = arith.constant 1 : index
    %c0_11 = arith.constant 0 : index
    %8 = vector.load %arg8[%c0_10, %c1, %c0_11] : memref<2x8x128xf32, #tpu.memory_space<vmem>>, vector<1x1x32xf32>
    %9 = vector.shape_cast %8 : vector<1x1x32xf32> to vector<1x32xf32>
    %c0_12 = arith.constant 0 : index
    %c2 = arith.constant 2 : index
    %c0_13 = arith.constant 0 : index
    %10 = vector.load %arg8[%c0_12, %c2, %c0_13] : memref<2x8x128xf32, #tpu.memory_space<vmem>>, vector<1x1x32xf32>
    %11 = vector.shape_cast %10 : vector<1x1x32xf32> to vector<1x32xf32>
    %c0_14 = arith.constant 0 : index
    %c3 = arith.constant 3 : index
    %c0_15 = arith.constant 0 : index
    %12 = vector.load %arg8[%c0_14, %c3, %c0_15] : memref<2x8x128xf32, #tpu.memory_space<vmem>>, vector<1x1x32xf32>
    %13 = vector.shape_cast %12 : vector<1x1x32xf32> to vector<1x32xf32>
    %c0_16 = arith.constant 0 : index
    %c4 = arith.constant 4 : index
    %c0_17 = arith.constant 0 : index
    %14 = vector.load %arg8[%c0_16, %c4, %c0_17] : memref<2x8x128xf32, #tpu.memory_space<vmem>>, vector<1x1x96xf32>
    %15 = vector.shape_cast %14 : vector<1x1x96xf32> to vector<1x96xf32>
    %c0_18 = arith.constant 0 : index
    %c5 = arith.constant 5 : index
    %c0_19 = arith.constant 0 : index
    %16 = vector.load %arg8[%c0_18, %c5, %c0_19] : memref<2x8x128xf32, #tpu.memory_space<vmem>>, vector<1x1x32xf32>
    %17 = vector.shape_cast %16 : vector<1x1x32xf32> to vector<1x32xf32>
    %c0_20 = arith.constant 0 : index
    %c6 = arith.constant 6 : index
    %c0_21 = arith.constant 0 : index
    %18 = vector.load %arg8[%c0_20, %c6, %c0_21] : memref<2x8x128xf32, #tpu.memory_space<vmem>>, vector<1x1x128xf32>
    %19 = vector.shape_cast %18 : vector<1x1x128xf32> to vector<1x128xf32>
    %c0_22 = arith.constant 0 : index
    %c7 = arith.constant 7 : index
    %c0_23 = arith.constant 0 : index
    %20 = vector.load %arg8[%c0_22, %c7, %c0_23] : memref<2x8x128xf32, #tpu.memory_space<vmem>>, vector<1x1x32xf32>
    %21 = vector.shape_cast %20 : vector<1x1x32xf32> to vector<1x32xf32>
    %cst_24 = arith.constant dense<0.000000e+00> : vector<10xf32>
    %22 = vector.multi_reduction <add>, %4, %cst_24 [1] : vector<10x32xf32> to vector<10xf32>
    %23 = vector.shape_cast %22 : vector<10xf32> to vector<10x1xf32>
    %cst_25 = arith.constant 3.200000e+01 : f32
    %24 = vector.broadcast %cst_25 : f32 to vector<10x1xf32>
    %25 = arith.divf %23, %24 : vector<10x1xf32>
    %26 = vector.broadcast %25 : vector<10x1xf32> to vector<10x32xf32>
    %27 = arith.subf %4, %26 : vector<10x32xf32>
    %28 = arith.mulf %27, %27 : vector<10x32xf32>
    %cst_26 = arith.constant dense<0.000000e+00> : vector<10xf32>
    %29 = vector.multi_reduction <add>, %28, %cst_26 [1] : vector<10x32xf32> to vector<10xf32>
    %30 = vector.shape_cast %29 : vector<10xf32> to vector<10x1xf32>
    %cst_27 = arith.constant 3.200000e+01 : f32
    %31 = vector.broadcast %cst_27 : f32 to vector<10x1xf32>
    %32 = arith.divf %30, %31 : vector<10x1xf32>
    %33 = vector.broadcast %25 : vector<10x1xf32> to vector<10x32xf32>
    %34 = arith.subf %4, %33 : vector<10x32xf32>
    %cst_28 = arith.constant 9.99999996E-13 : f32
    %35 = vector.broadcast %cst_28 : f32 to vector<10x1xf32>
    %36 = arith.addf %32, %35 : vector<10x1xf32>
    %37 = math.rsqrt %36 : vector<10x1xf32>
    %38 = vector.broadcast %37 : vector<10x1xf32> to vector<10x32xf32>
    %39 = arith.mulf %34, %38 : vector<10x32xf32>
    %40 = vector.broadcast %7 : vector<1x32xf32> to vector<10x32xf32>
    %41 = arith.mulf %39, %40 : vector<10x32xf32>
    %42 = vector.broadcast %9 : vector<1x32xf32> to vector<10x32xf32>
    %43 = arith.addf %41, %42 : vector<10x32xf32>
    %44 = arith.truncf %43 : vector<10x32xf32> to vector<10x32xbf16>
    %c0_29 = arith.constant 0 : index
    %c0_30 = arith.constant 0 : index
    %c0_31 = arith.constant 0 : index
    %45 = vector.load %arg4[%c0_29, %c0_30, %c0_31] : memref<2x32x96xbf16, #tpu.memory_space<vmem>>, vector<1x32x96xbf16>
    %46 = vector.shape_cast %45 : vector<1x32x96xbf16> to vector<32x96xbf16>
    %cst_32 = arith.constant dense<0.000000e+00> : vector<10x96xf32>
    %47 = tpu.matmul %44, %46, %cst_32 {dimension_numbers = #tpu.dot_dimension_numbers<[1], [0], [0], [1], [0, 0, 1, 1], [], []>} : vector<10x32xbf16>, vector<32x96xbf16>, vector<10x96xf32> -> vector<10x96xf32>
    %48 = vector.broadcast %15 : vector<1x96xf32> to vector<10x96xf32>
    %49 = arith.addf %47, %48 : vector<10x96xf32>
    %50 = vector.extract_strided_slice %49 {offsets = [0, 0], sizes = [10, 16], strides = [1, 1]} : vector<10x96xf32> to vector<10x16xf32>
    %51 = arith.truncf %50 : vector<10x16xf32> to vector<10x16xbf16>
    %52 = vector.extract_strided_slice %49 {offsets = [0, 32], sizes = [10, 16], strides = [1, 1]} : vector<10x96xf32> to vector<10x16xf32>
    %53 = arith.truncf %52 : vector<10x16xf32> to vector<10x16xbf16>
    %54 = vector.extract_strided_slice %49 {offsets = [0, 64], sizes = [10, 16], strides = [1, 1]} : vector<10x96xf32> to vector<10x16xf32>
    %55 = arith.truncf %54 : vector<10x16xf32> to vector<10x16xbf16>
    %cst_33 = arith.constant dense<0.000000e+00> : vector<10x10xf32>
    %56 = tpu.matmul %51, %53, %cst_33 {dimension_numbers = #tpu.dot_dimension_numbers<[1], [1], [0], [0], [0, 0, 1, 0], [], []>} : vector<10x16xbf16>, vector<10x16xbf16>, vector<10x10xf32> -> vector<10x10xf32>
    %57 = arith.addf %56, %5 : vector<10x10xf32>
    %cst_34 = arith.constant dense<0xFF800000> : vector<10xf32>
    %58 = vector.multi_reduction <maximumf>, %57, %cst_34 [1] : vector<10x10xf32> to vector<10xf32>
    %59 = vector.shape_cast %58 : vector<10xf32> to vector<10x1xf32>
    %60 = vector.broadcast %59 : vector<10x1xf32> to vector<10x10xf32>
    %61 = arith.subf %57, %60 : vector<10x10xf32>
    %62 = math.exp %61 : vector<10x10xf32>
    %cst_35 = arith.constant dense<0.000000e+00> : vector<10xf32>
    %63 = vector.multi_reduction <add>, %62, %cst_35 [1] : vector<10x10xf32> to vector<10xf32>
    %64 = vector.shape_cast %63 : vector<10xf32> to vector<10x1xf32>
    %65 = tpu.reciprocal %64 {approx = true} : vector<10x1xf32> -> vector<10x1xf32>
    %66 = vector.broadcast %65 : vector<10x1xf32> to vector<10x10xf32>
    %67 = arith.mulf %62, %66 : vector<10x10xf32>
    %68 = arith.truncf %67 : vector<10x10xf32> to vector<10x10xbf16>
    %cst_36 = arith.constant dense<0.000000e+00> : vector<10x16xf32>
    %69 = tpu.matmul %68, %55, %cst_36 {dimension_numbers = #tpu.dot_dimension_numbers<[1], [0], [0], [1], [0, 0, 1, 1], [], []>} : vector<10x10xbf16>, vector<10x16xbf16>, vector<10x16xf32> -> vector<10x16xf32>
    %70 = vector.extract_strided_slice %49 {offsets = [0, 16], sizes = [10, 16], strides = [1, 1]} : vector<10x96xf32> to vector<10x16xf32>
    %71 = arith.truncf %70 : vector<10x16xf32> to vector<10x16xbf16>
    %72 = vector.extract_strided_slice %49 {offsets = [0, 48], sizes = [10, 16], strides = [1, 1]} : vector<10x96xf32> to vector<10x16xf32>
    %73 = arith.truncf %72 : vector<10x16xf32> to vector<10x16xbf16>
    %74 = vector.extract_strided_slice %49 {offsets = [0, 80], sizes = [10, 16], strides = [1, 1]} : vector<10x96xf32> to vector<10x16xf32>
    %75 = arith.truncf %74 : vector<10x16xf32> to vector<10x16xbf16>
    %cst_37 = arith.constant dense<0.000000e+00> : vector<10x10xf32>
    %76 = tpu.matmul %71, %73, %cst_37 {dimension_numbers = #tpu.dot_dimension_numbers<[1], [1], [0], [0], [0, 0, 1, 0], [], []>} : vector<10x16xbf16>, vector<10x16xbf16>, vector<10x10xf32> -> vector<10x10xf32>
    %77 = arith.addf %76, %5 : vector<10x10xf32>
    %cst_38 = arith.constant dense<0xFF800000> : vector<10xf32>
    %78 = vector.multi_reduction <maximumf>, %77, %cst_38 [1] : vector<10x10xf32> to vector<10xf32>
    %79 = vector.shape_cast %78 : vector<10xf32> to vector<10x1xf32>
    %80 = vector.broadcast %79 : vector<10x1xf32> to vector<10x10xf32>
    %81 = arith.subf %77, %80 : vector<10x10xf32>
    %82 = math.exp %81 : vector<10x10xf32>
    %cst_39 = arith.constant dense<0.000000e+00> : vector<10xf32>
    %83 = vector.multi_reduction <add>, %82, %cst_39 [1] : vector<10x10xf32> to vector<10xf32>
    %84 = vector.shape_cast %83 : vector<10xf32> to vector<10x1xf32>
    %85 = tpu.reciprocal %84 {approx = true} : vector<10x1xf32> -> vector<10x1xf32>
    %86 = vector.broadcast %85 : vector<10x1xf32> to vector<10x10xf32>
    %87 = arith.mulf %82, %86 : vector<10x10xf32>
    %88 = arith.truncf %87 : vector<10x10xf32> to vector<10x10xbf16>
    %cst_40 = arith.constant dense<0.000000e+00> : vector<10x16xf32>
    %89 = tpu.matmul %88, %75, %cst_40 {dimension_numbers = #tpu.dot_dimension_numbers<[1], [0], [0], [1], [0, 0, 1, 1], [], []>} : vector<10x10xbf16>, vector<10x16xbf16>, vector<10x16xf32> -> vector<10x16xf32>
    %90 = tpu.concatenate %69, %89 in 1 : vector<10x16xf32>, vector<10x16xf32> -> vector<10x32xf32>
    %91 = arith.truncf %90 : vector<10x32xf32> to vector<10x32xbf16>
    %c0_41 = arith.constant 0 : index
    %c0_42 = arith.constant 0 : index
    %c0_43 = arith.constant 0 : index
    %92 = vector.load %arg5[%c0_41, %c0_42, %c0_43] : memref<2x32x32xbf16, #tpu.memory_space<vmem>>, vector<1x32x32xbf16>
    %93 = vector.shape_cast %92 : vector<1x32x32xbf16> to vector<32x32xbf16>
    %cst_44 = arith.constant dense<0.000000e+00> : vector<10x32xf32>
    %94 = tpu.matmul %91, %93, %cst_44 {dimension_numbers = #tpu.dot_dimension_numbers<[1], [0], [0], [1], [0, 0, 1, 1], [], []>} : vector<10x32xbf16>, vector<32x32xbf16>, vector<10x32xf32> -> vector<10x32xf32>
    %95 = vector.broadcast %17 : vector<1x32xf32> to vector<10x32xf32>
    %96 = arith.addf %94, %95 : vector<10x32xf32>
    %97 = arith.addf %4, %96 : vector<10x32xf32>
    %cst_45 = arith.constant dense<0.000000e+00> : vector<10xf32>
    %98 = vector.multi_reduction <add>, %97, %cst_45 [1] : vector<10x32xf32> to vector<10xf32>
    %99 = vector.shape_cast %98 : vector<10xf32> to vector<10x1xf32>
    %cst_46 = arith.constant 3.200000e+01 : f32
    %100 = vector.broadcast %cst_46 : f32 to vector<10x1xf32>
    %101 = arith.divf %99, %100 : vector<10x1xf32>
    %102 = vector.broadcast %101 : vector<10x1xf32> to vector<10x32xf32>
    %103 = arith.subf %97, %102 : vector<10x32xf32>
    %104 = arith.mulf %103, %103 : vector<10x32xf32>
    %cst_47 = arith.constant dense<0.000000e+00> : vector<10xf32>
    %105 = vector.multi_reduction <add>, %104, %cst_47 [1] : vector<10x32xf32> to vector<10xf32>
    %106 = vector.shape_cast %105 : vector<10xf32> to vector<10x1xf32>
    %cst_48 = arith.constant 3.200000e+01 : f32
    %107 = vector.broadcast %cst_48 : f32 to vector<10x1xf32>
    %108 = arith.divf %106, %107 : vector<10x1xf32>
    %109 = vector.broadcast %101 : vector<10x1xf32> to vector<10x32xf32>
    %110 = arith.subf %97, %109 : vector<10x32xf32>
    %cst_49 = arith.constant 9.99999996E-13 : f32
    %111 = vector.broadcast %cst_49 : f32 to vector<10x1xf32>
    %112 = arith.addf %108, %111 : vector<10x1xf32>
    %113 = math.rsqrt %112 : vector<10x1xf32>
    %114 = vector.broadcast %113 : vector<10x1xf32> to vector<10x32xf32>
    %115 = arith.mulf %110, %114 : vector<10x32xf32>
    %116 = vector.broadcast %11 : vector<1x32xf32> to vector<10x32xf32>
    %117 = arith.mulf %115, %116 : vector<10x32xf32>
    %118 = vector.broadcast %13 : vector<1x32xf32> to vector<10x32xf32>
    %119 = arith.addf %117, %118 : vector<10x32xf32>
    %120 = arith.truncf %119 : vector<10x32xf32> to vector<10x32xbf16>
    %c0_50 = arith.constant 0 : index
    %c0_51 = arith.constant 0 : index
    %c0_52 = arith.constant 0 : index
    %121 = vector.load %arg6[%c0_50, %c0_51, %c0_52] : memref<2x32x128xbf16, #tpu.memory_space<vmem>>, vector<1x32x128xbf16>
    %122 = vector.shape_cast %121 : vector<1x32x128xbf16> to vector<32x128xbf16>
    %cst_53 = arith.constant dense<0.000000e+00> : vector<10x128xf32>
    %123 = tpu.matmul %120, %122, %cst_53 {dimension_numbers = #tpu.dot_dimension_numbers<[1], [0], [0], [1], [0, 0, 1, 1], [], []>} : vector<10x32xbf16>, vector<32x128xbf16>, vector<10x128xf32> -> vector<10x128xf32>
    %124 = vector.broadcast %19 : vector<1x128xf32> to vector<10x128xf32>
    %125 = arith.addf %123, %124 : vector<10x128xf32>
    %126 = arith.mulf %125, %125 : vector<10x128xf32>
    %127 = arith.mulf %125, %126 : vector<10x128xf32>
    %cst_54 = arith.constant 4.471500e-02 : f32
    %128 = vector.broadcast %cst_54 : f32 to vector<10x128xf32>
    %129 = arith.mulf %128, %127 : vector<10x128xf32>
    %130 = arith.addf %125, %129 : vector<10x128xf32>
    %cst_55 = arith.constant 0.797884583 : f32
    %131 = vector.broadcast %cst_55 : f32 to vector<10x128xf32>
    %132 = arith.mulf %131, %130 : vector<10x128xf32>
    %133 = math.tanh %132 : vector<10x128xf32>
    %cst_56 = arith.constant 1.000000e+00 : f32
    %134 = vector.broadcast %cst_56 : f32 to vector<10x128xf32>
    %135 = arith.addf %134, %133 : vector<10x128xf32>
    %cst_57 = arith.constant 5.000000e-01 : f32
    %136 = vector.broadcast %cst_57 : f32 to vector<10x128xf32>
    %137 = arith.mulf %136, %135 : vector<10x128xf32>
    %138 = arith.mulf %125, %137 : vector<10x128xf32>
    %139 = arith.truncf %138 : vector<10x128xf32> to vector<10x128xbf16>
    %c0_58 = arith.constant 0 : index
    %c0_59 = arith.constant 0 : index
    %c0_60 = arith.constant 0 : index
    %140 = vector.load %arg7[%c0_58, %c0_59, %c0_60] : memref<2x128x32xbf16, #tpu.memory_space<vmem>>, vector<1x128x32xbf16>
    %141 = vector.shape_cast %140 : vector<1x128x32xbf16> to vector<128x32xbf16>
    %cst_61 = arith.constant dense<0.000000e+00> : vector<10x32xf32>
    %142 = tpu.matmul %139, %141, %cst_61 {dimension_numbers = #tpu.dot_dimension_numbers<[1], [0], [0], [1], [0, 0, 1, 1], [], []>} : vector<10x128xbf16>, vector<128x32xbf16>, vector<10x32xf32> -> vector<10x32xf32>
    %143 = vector.broadcast %21 : vector<1x32xf32> to vector<10x32xf32>
    %144 = arith.addf %142, %143 : vector<10x32xf32>
    %145 = arith.addf %97, %144 : vector<10x32xf32>
    %c1_62 = arith.constant 1 : index
    %c0_63 = arith.constant 0 : index
    %c0_64 = arith.constant 0 : index
    %146 = vector.load %arg8[%c1_62, %c0_63, %c0_64] : memref<2x8x128xf32, #tpu.memory_space<vmem>>, vector<1x1x32xf32>
    %147 = vector.shape_cast %146 : vector<1x1x32xf32> to vector<1x32xf32>
    %c1_65 = arith.constant 1 : index
    %c1_66 = arith.constant 1 : index
    %c0_67 = arith.constant 0 : index
    %148 = vector.load %arg8[%c1_65, %c1_66, %c0_67] : memref<2x8x128xf32, #tpu.memory_space<vmem>>, vector<1x1x32xf32>
    %149 = vector.shape_cast %148 : vector<1x1x32xf32> to vector<1x32xf32>
    %c1_68 = arith.constant 1 : index
    %c2_69 = arith.constant 2 : index
    %c0_70 = arith.constant 0 : index
    %150 = vector.load %arg8[%c1_68, %c2_69, %c0_70] : memref<2x8x128xf32, #tpu.memory_space<vmem>>, vector<1x1x32xf32>
    %151 = vector.shape_cast %150 : vector<1x1x32xf32> to vector<1x32xf32>
    %c1_71 = arith.constant 1 : index
    %c3_72 = arith.constant 3 : index
    %c0_73 = arith.constant 0 : index
    %152 = vector.load %arg8[%c1_71, %c3_72, %c0_73] : memref<2x8x128xf32, #tpu.memory_space<vmem>>, vector<1x1x32xf32>
    %153 = vector.shape_cast %152 : vector<1x1x32xf32> to vector<1x32xf32>
    %c1_74 = arith.constant 1 : index
    %c4_75 = arith.constant 4 : index
    %c0_76 = arith.constant 0 : index
    %154 = vector.load %arg8[%c1_74, %c4_75, %c0_76] : memref<2x8x128xf32, #tpu.memory_space<vmem>>, vector<1x1x96xf32>
    %155 = vector.shape_cast %154 : vector<1x1x96xf32> to vector<1x96xf32>
    %c1_77 = arith.constant 1 : index
    %c5_78 = arith.constant 5 : index
    %c0_79 = arith.constant 0 : index
    %156 = vector.load %arg8[%c1_77, %c5_78, %c0_79] : memref<2x8x128xf32, #tpu.memory_space<vmem>>, vector<1x1x32xf32>
    %157 = vector.shape_cast %156 : vector<1x1x32xf32> to vector<1x32xf32>
    %c1_80 = arith.constant 1 : index
    %c6_81 = arith.constant 6 : index
    %c0_82 = arith.constant 0 : index
    %158 = vector.load %arg8[%c1_80, %c6_81, %c0_82] : memref<2x8x128xf32, #tpu.memory_space<vmem>>, vector<1x1x128xf32>
    %159 = vector.shape_cast %158 : vector<1x1x128xf32> to vector<1x128xf32>
    %c1_83 = arith.constant 1 : index
    %c7_84 = arith.constant 7 : index
    %c0_85 = arith.constant 0 : index
    %160 = vector.load %arg8[%c1_83, %c7_84, %c0_85] : memref<2x8x128xf32, #tpu.memory_space<vmem>>, vector<1x1x32xf32>
    %161 = vector.shape_cast %160 : vector<1x1x32xf32> to vector<1x32xf32>
    %cst_86 = arith.constant dense<0.000000e+00> : vector<10xf32>
    %162 = vector.multi_reduction <add>, %145, %cst_86 [1] : vector<10x32xf32> to vector<10xf32>
    %163 = vector.shape_cast %162 : vector<10xf32> to vector<10x1xf32>
    %cst_87 = arith.constant 3.200000e+01 : f32
    %164 = vector.broadcast %cst_87 : f32 to vector<10x1xf32>
    %165 = arith.divf %163, %164 : vector<10x1xf32>
    %166 = vector.broadcast %165 : vector<10x1xf32> to vector<10x32xf32>
    %167 = arith.subf %145, %166 : vector<10x32xf32>
    %168 = arith.mulf %167, %167 : vector<10x32xf32>
    %cst_88 = arith.constant dense<0.000000e+00> : vector<10xf32>
    %169 = vector.multi_reduction <add>, %168, %cst_88 [1] : vector<10x32xf32> to vector<10xf32>
    %170 = vector.shape_cast %169 : vector<10xf32> to vector<10x1xf32>
    %cst_89 = arith.constant 3.200000e+01 : f32
    %171 = vector.broadcast %cst_89 : f32 to vector<10x1xf32>
    %172 = arith.divf %170, %171 : vector<10x1xf32>
    %173 = vector.broadcast %165 : vector<10x1xf32> to vector<10x32xf32>
    %174 = arith.subf %145, %173 : vector<10x32xf32>
    %cst_90 = arith.constant 9.99999996E-13 : f32
    %175 = vector.broadcast %cst_90 : f32 to vector<10x1xf32>
    %176 = arith.addf %172, %175 : vector<10x1xf32>
    %177 = math.rsqrt %176 : vector<10x1xf32>
    %178 = vector.broadcast %177 : vector<10x1xf32> to vector<10x32xf32>
    %179 = arith.mulf %174, %178 : vector<10x32xf32>
    %180 = vector.broadcast %147 : vector<1x32xf32> to vector<10x32xf32>
    %181 = arith.mulf %179, %180 : vector<10x32xf32>
    %182 = vector.broadcast %149 : vector<1x32xf32> to vector<10x32xf32>
    %183 = arith.addf %181, %182 : vector<10x32xf32>
    %184 = arith.truncf %183 : vector<10x32xf32> to vector<10x32xbf16>
    %c1_91 = arith.constant 1 : index
    %c0_92 = arith.constant 0 : index
    %c0_93 = arith.constant 0 : index
    %185 = vector.load %arg4[%c1_91, %c0_92, %c0_93] : memref<2x32x96xbf16, #tpu.memory_space<vmem>>, vector<1x32x96xbf16>
    %186 = vector.shape_cast %185 : vector<1x32x96xbf16> to vector<32x96xbf16>
    %cst_94 = arith.constant dense<0.000000e+00> : vector<10x96xf32>
    %187 = tpu.matmul %184, %186, %cst_94 {dimension_numbers = #tpu.dot_dimension_numbers<[1], [0], [0], [1], [0, 0, 1, 1], [], []>} : vector<10x32xbf16>, vector<32x96xbf16>, vector<10x96xf32> -> vector<10x96xf32>
    %188 = vector.broadcast %155 : vector<1x96xf32> to vector<10x96xf32>
    %189 = arith.addf %187, %188 : vector<10x96xf32>
    %190 = vector.extract_strided_slice %189 {offsets = [0, 0], sizes = [10, 16], strides = [1, 1]} : vector<10x96xf32> to vector<10x16xf32>
    %191 = arith.truncf %190 : vector<10x16xf32> to vector<10x16xbf16>
    %192 = vector.extract_strided_slice %189 {offsets = [0, 32], sizes = [10, 16], strides = [1, 1]} : vector<10x96xf32> to vector<10x16xf32>
    %193 = arith.truncf %192 : vector<10x16xf32> to vector<10x16xbf16>
    %194 = vector.extract_strided_slice %189 {offsets = [0, 64], sizes = [10, 16], strides = [1, 1]} : vector<10x96xf32> to vector<10x16xf32>
    %195 = arith.truncf %194 : vector<10x16xf32> to vector<10x16xbf16>
    %cst_95 = arith.constant dense<0.000000e+00> : vector<10x10xf32>
    %196 = tpu.matmul %191, %193, %cst_95 {dimension_numbers = #tpu.dot_dimension_numbers<[1], [1], [0], [0], [0, 0, 1, 0], [], []>} : vector<10x16xbf16>, vector<10x16xbf16>, vector<10x10xf32> -> vector<10x10xf32>
    %197 = arith.addf %196, %5 : vector<10x10xf32>
    %cst_96 = arith.constant dense<0xFF800000> : vector<10xf32>
    %198 = vector.multi_reduction <maximumf>, %197, %cst_96 [1] : vector<10x10xf32> to vector<10xf32>
    %199 = vector.shape_cast %198 : vector<10xf32> to vector<10x1xf32>
    %200 = vector.broadcast %199 : vector<10x1xf32> to vector<10x10xf32>
    %201 = arith.subf %197, %200 : vector<10x10xf32>
    %202 = math.exp %201 : vector<10x10xf32>
    %cst_97 = arith.constant dense<0.000000e+00> : vector<10xf32>
    %203 = vector.multi_reduction <add>, %202, %cst_97 [1] : vector<10x10xf32> to vector<10xf32>
    %204 = vector.shape_cast %203 : vector<10xf32> to vector<10x1xf32>
    %205 = tpu.reciprocal %204 {approx = true} : vector<10x1xf32> -> vector<10x1xf32>
    %206 = vector.broadcast %205 : vector<10x1xf32> to vector<10x10xf32>
    %207 = arith.mulf %202, %206 : vector<10x10xf32>
    %208 = arith.truncf %207 : vector<10x10xf32> to vector<10x10xbf16>
    %cst_98 = arith.constant dense<0.000000e+00> : vector<10x16xf32>
    %209 = tpu.matmul %208, %195, %cst_98 {dimension_numbers = #tpu.dot_dimension_numbers<[1], [0], [0], [1], [0, 0, 1, 1], [], []>} : vector<10x10xbf16>, vector<10x16xbf16>, vector<10x16xf32> -> vector<10x16xf32>
    %210 = vector.extract_strided_slice %189 {offsets = [0, 16], sizes = [10, 16], strides = [1, 1]} : vector<10x96xf32> to vector<10x16xf32>
    %211 = arith.truncf %210 : vector<10x16xf32> to vector<10x16xbf16>
    %212 = vector.extract_strided_slice %189 {offsets = [0, 48], sizes = [10, 16], strides = [1, 1]} : vector<10x96xf32> to vector<10x16xf32>
    %213 = arith.truncf %212 : vector<10x16xf32> to vector<10x16xbf16>
    %214 = vector.extract_strided_slice %189 {offsets = [0, 80], sizes = [10, 16], strides = [1, 1]} : vector<10x96xf32> to vector<10x16xf32>
    %215 = arith.truncf %214 : vector<10x16xf32> to vector<10x16xbf16>
    %cst_99 = arith.constant dense<0.000000e+00> : vector<10x10xf32>
    %216 = tpu.matmul %211, %213, %cst_99 {dimension_numbers = #tpu.dot_dimension_numbers<[1], [1], [0], [0], [0, 0, 1, 0], [], []>} : vector<10x16xbf16>, vector<10x16xbf16>, vector<10x10xf32> -> vector<10x10xf32>
    %217 = arith.addf %216, %5 : vector<10x10xf32>
    %cst_100 = arith.constant dense<0xFF800000> : vector<10xf32>
    %218 = vector.multi_reduction <maximumf>, %217, %cst_100 [1] : vector<10x10xf32> to vector<10xf32>
    %219 = vector.shape_cast %218 : vector<10xf32> to vector<10x1xf32>
    %220 = vector.broadcast %219 : vector<10x1xf32> to vector<10x10xf32>
    %221 = arith.subf %217, %220 : vector<10x10xf32>
    %222 = math.exp %221 : vector<10x10xf32>
    %cst_101 = arith.constant dense<0.000000e+00> : vector<10xf32>
    %223 = vector.multi_reduction <add>, %222, %cst_101 [1] : vector<10x10xf32> to vector<10xf32>
    %224 = vector.shape_cast %223 : vector<10xf32> to vector<10x1xf32>
    %225 = tpu.reciprocal %224 {approx = true} : vector<10x1xf32> -> vector<10x1xf32>
    %226 = vector.broadcast %225 : vector<10x1xf32> to vector<10x10xf32>
    %227 = arith.mulf %222, %226 : vector<10x10xf32>
    %228 = arith.truncf %227 : vector<10x10xf32> to vector<10x10xbf16>
    %cst_102 = arith.constant dense<0.000000e+00> : vector<10x16xf32>
    %229 = tpu.matmul %228, %215, %cst_102 {dimension_numbers = #tpu.dot_dimension_numbers<[1], [0], [0], [1], [0, 0, 1, 1], [], []>} : vector<10x10xbf16>, vector<10x16xbf16>, vector<10x16xf32> -> vector<10x16xf32>
    %230 = tpu.concatenate %209, %229 in 1 : vector<10x16xf32>, vector<10x16xf32> -> vector<10x32xf32>
    %231 = arith.truncf %230 : vector<10x32xf32> to vector<10x32xbf16>
    %c1_103 = arith.constant 1 : index
    %c0_104 = arith.constant 0 : index
    %c0_105 = arith.constant 0 : index
    %232 = vector.load %arg5[%c1_103, %c0_104, %c0_105] : memref<2x32x32xbf16, #tpu.memory_space<vmem>>, vector<1x32x32xbf16>
    %233 = vector.shape_cast %232 : vector<1x32x32xbf16> to vector<32x32xbf16>
    %cst_106 = arith.constant dense<0.000000e+00> : vector<10x32xf32>
    %234 = tpu.matmul %231, %233, %cst_106 {dimension_numbers = #tpu.dot_dimension_numbers<[1], [0], [0], [1], [0, 0, 1, 1], [], []>} : vector<10x32xbf16>, vector<32x32xbf16>, vector<10x32xf32> -> vector<10x32xf32>
    %235 = vector.broadcast %157 : vector<1x32xf32> to vector<10x32xf32>
    %236 = arith.addf %234, %235 : vector<10x32xf32>
    %237 = arith.addf %145, %236 : vector<10x32xf32>
    %cst_107 = arith.constant dense<0.000000e+00> : vector<10xf32>
    %238 = vector.multi_reduction <add>, %237, %cst_107 [1] : vector<10x32xf32> to vector<10xf32>
    %239 = vector.shape_cast %238 : vector<10xf32> to vector<10x1xf32>
    %cst_108 = arith.constant 3.200000e+01 : f32
    %240 = vector.broadcast %cst_108 : f32 to vector<10x1xf32>
    %241 = arith.divf %239, %240 : vector<10x1xf32>
    %242 = vector.broadcast %241 : vector<10x1xf32> to vector<10x32xf32>
    %243 = arith.subf %237, %242 : vector<10x32xf32>
    %244 = arith.mulf %243, %243 : vector<10x32xf32>
    %cst_109 = arith.constant dense<0.000000e+00> : vector<10xf32>
    %245 = vector.multi_reduction <add>, %244, %cst_109 [1] : vector<10x32xf32> to vector<10xf32>
    %246 = vector.shape_cast %245 : vector<10xf32> to vector<10x1xf32>
    %cst_110 = arith.constant 3.200000e+01 : f32
    %247 = vector.broadcast %cst_110 : f32 to vector<10x1xf32>
    %248 = arith.divf %246, %247 : vector<10x1xf32>
    %249 = vector.broadcast %241 : vector<10x1xf32> to vector<10x32xf32>
    %250 = arith.subf %237, %249 : vector<10x32xf32>
    %cst_111 = arith.constant 9.99999996E-13 : f32
    %251 = vector.broadcast %cst_111 : f32 to vector<10x1xf32>
    %252 = arith.addf %248, %251 : vector<10x1xf32>
    %253 = math.rsqrt %252 : vector<10x1xf32>
    %254 = vector.broadcast %253 : vector<10x1xf32> to vector<10x32xf32>
    %255 = arith.mulf %250, %254 : vector<10x32xf32>
    %256 = vector.broadcast %151 : vector<1x32xf32> to vector<10x32xf32>
    %257 = arith.mulf %255, %256 : vector<10x32xf32>
    %258 = vector.broadcast %153 : vector<1x32xf32> to vector<10x32xf32>
    %259 = arith.addf %257, %258 : vector<10x32xf32>
    %260 = arith.truncf %259 : vector<10x32xf32> to vector<10x32xbf16>
    %c1_112 = arith.constant 1 : index
    %c0_113 = arith.constant 0 : index
    %c0_114 = arith.constant 0 : index
    %261 = vector.load %arg6[%c1_112, %c0_113, %c0_114] : memref<2x32x128xbf16, #tpu.memory_space<vmem>>, vector<1x32x128xbf16>
    %262 = vector.shape_cast %261 : vector<1x32x128xbf16> to vector<32x128xbf16>
    %cst_115 = arith.constant dense<0.000000e+00> : vector<10x128xf32>
    %263 = tpu.matmul %260, %262, %cst_115 {dimension_numbers = #tpu.dot_dimension_numbers<[1], [0], [0], [1], [0, 0, 1, 1], [], []>} : vector<10x32xbf16>, vector<32x128xbf16>, vector<10x128xf32> -> vector<10x128xf32>
    %264 = vector.broadcast %159 : vector<1x128xf32> to vector<10x128xf32>
    %265 = arith.addf %263, %264 : vector<10x128xf32>
    %266 = arith.mulf %265, %265 : vector<10x128xf32>
    %267 = arith.mulf %265, %266 : vector<10x128xf32>
    %cst_116 = arith.constant 4.471500e-02 : f32
    %268 = vector.broadcast %cst_116 : f32 to vector<10x128xf32>
    %269 = arith.mulf %268, %267 : vector<10x128xf32>
    %270 = arith.addf %265, %269 : vector<10x128xf32>
    %cst_117 = arith.constant 0.797884583 : f32
    %271 = vector.broadcast %cst_117 : f32 to vector<10x128xf32>
    %272 = arith.mulf %271, %270 : vector<10x128xf32>
    %273 = math.tanh %272 : vector<10x128xf32>
    %cst_118 = arith.constant 1.000000e+00 : f32
    %274 = vector.broadcast %cst_118 : f32 to vector<10x128xf32>
    %275 = arith.addf %274, %273 : vector<10x128xf32>
    %cst_119 = arith.constant 5.000000e-01 : f32
    %276 = vector.broadcast %cst_119 : f32 to vector<10x128xf32>
    %277 = arith.mulf %276, %275 : vector<10x128xf32>
    %278 = arith.mulf %265, %277 : vector<10x128xf32>
    %279 = arith.truncf %278 : vector<10x128xf32> to vector<10x128xbf16>
    %c1_120 = arith.constant 1 : index
    %c0_121 = arith.constant 0 : index
    %c0_122 = arith.constant 0 : index
    %280 = vector.load %arg7[%c1_120, %c0_121, %c0_122] : memref<2x128x32xbf16, #tpu.memory_space<vmem>>, vector<1x128x32xbf16>
    %281 = vector.shape_cast %280 : vector<1x128x32xbf16> to vector<128x32xbf16>
    %cst_123 = arith.constant dense<0.000000e+00> : vector<10x32xf32>
    %282 = tpu.matmul %279, %281, %cst_123 {dimension_numbers = #tpu.dot_dimension_numbers<[1], [0], [0], [1], [0, 0, 1, 1], [], []>} : vector<10x128xbf16>, vector<128x32xbf16>, vector<10x32xf32> -> vector<10x32xf32>
    %283 = vector.broadcast %161 : vector<1x32xf32> to vector<10x32xf32>
    %284 = arith.addf %282, %283 : vector<10x32xf32>
    %285 = arith.addf %237, %284 : vector<10x32xf32>
    %286 = vector.extract_strided_slice %285 {offsets = [0, 0], sizes = [2, 32], strides = [1, 1]} : vector<10x32xf32> to vector<2x32xf32>
    %c0_124 = arith.constant 0 : index
    %c0_125 = arith.constant 0 : index
    %287 = vector.load %arg12[%c0_124, %c0_125] : memref<4x256xf32, #tpu.memory_space<vmem>>, vector<1x32xf32>
    %c0_126 = arith.constant 0 : index
    %c32 = arith.constant 32 : index
    %288 = vector.load %arg12[%c0_126, %c32] : memref<4x256xf32, #tpu.memory_space<vmem>>, vector<1x32xf32>
    %c1_127 = arith.constant 1 : index
    %c0_128 = arith.constant 0 : index
    %289 = vector.load %arg12[%c1_127, %c0_128] : memref<4x256xf32, #tpu.memory_space<vmem>>, vector<1x256xf32>
    %c2_129 = arith.constant 2 : index
    %c0_130 = arith.constant 0 : index
    %290 = vector.load %arg12[%c2_129, %c0_130] : memref<4x256xf32, #tpu.memory_space<vmem>>, vector<1x128xf32>
    %c3_131 = arith.constant 3 : index
    %c0_132 = arith.constant 0 : index
    %291 = vector.load %arg12[%c3_131, %c0_132] : memref<4x256xf32, #tpu.memory_space<vmem>>, vector<1x128xf32>
    %cst_133 = arith.constant dense<0.000000e+00> : vector<2xf32>
    %292 = vector.multi_reduction <add>, %286, %cst_133 [1] : vector<2x32xf32> to vector<2xf32>
    %293 = vector.shape_cast %292 : vector<2xf32> to vector<2x1xf32>
    %cst_134 = arith.constant 3.200000e+01 : f32
    %294 = vector.broadcast %cst_134 : f32 to vector<2x1xf32>
    %295 = arith.divf %293, %294 : vector<2x1xf32>
    %296 = vector.broadcast %295 : vector<2x1xf32> to vector<2x32xf32>
    %297 = arith.subf %286, %296 : vector<2x32xf32>
    %298 = arith.mulf %297, %297 : vector<2x32xf32>
    %cst_135 = arith.constant dense<0.000000e+00> : vector<2xf32>
    %299 = vector.multi_reduction <add>, %298, %cst_135 [1] : vector<2x32xf32> to vector<2xf32>
    %300 = vector.shape_cast %299 : vector<2xf32> to vector<2x1xf32>
    %cst_136 = arith.constant 3.200000e+01 : f32
    %301 = vector.broadcast %cst_136 : f32 to vector<2x1xf32>
    %302 = arith.divf %300, %301 : vector<2x1xf32>
    %303 = vector.broadcast %295 : vector<2x1xf32> to vector<2x32xf32>
    %304 = arith.subf %286, %303 : vector<2x32xf32>
    %cst_137 = arith.constant 9.99999996E-13 : f32
    %305 = vector.broadcast %cst_137 : f32 to vector<2x1xf32>
    %306 = arith.addf %302, %305 : vector<2x1xf32>
    %307 = math.rsqrt %306 : vector<2x1xf32>
    %308 = vector.broadcast %307 : vector<2x1xf32> to vector<2x32xf32>
    %309 = arith.mulf %304, %308 : vector<2x32xf32>
    %310 = vector.broadcast %287 : vector<1x32xf32> to vector<2x32xf32>
    %311 = arith.mulf %309, %310 : vector<2x32xf32>
    %312 = vector.broadcast %288 : vector<1x32xf32> to vector<2x32xf32>
    %313 = arith.addf %311, %312 : vector<2x32xf32>
    %314 = arith.truncf %313 : vector<2x32xf32> to vector<2x32xbf16>
    %c0_138 = arith.constant 0 : index
    %c0_139 = arith.constant 0 : index
    %315 = vector.load %arg9[%c0_138, %c0_139] : memref<32x256xbf16, #tpu.memory_space<vmem>>, vector<32x256xbf16>
    %cst_140 = arith.constant dense<0.000000e+00> : vector<2x256xf32>
    %316 = tpu.matmul %314, %315, %cst_140 {dimension_numbers = #tpu.dot_dimension_numbers<[1], [0], [0], [1], [0, 0, 1, 1], [], []>} : vector<2x32xbf16>, vector<32x256xbf16>, vector<2x256xf32> -> vector<2x256xf32>
    %317 = vector.broadcast %289 : vector<1x256xf32> to vector<2x256xf32>
    %318 = arith.addf %316, %317 : vector<2x256xf32>
    %cst_141 = arith.constant 0.000000e+00 : f32
    %319 = vector.broadcast %cst_141 : f32 to vector<2x256xf32>
    %320 = arith.maximumf %318, %319 : vector<2x256xf32>
    %321 = arith.truncf %320 : vector<2x256xf32> to vector<2x256xbf16>
    %c0_142 = arith.constant 0 : index
    %c0_143 = arith.constant 0 : index
    %322 = vector.load %arg10[%c0_142, %c0_143] : memref<256x128xbf16, #tpu.memory_space<vmem>>, vector<256x128xbf16>
    %cst_144 = arith.constant dense<0.000000e+00> : vector<2x128xf32>
    %323 = tpu.matmul %321, %322, %cst_144 {dimension_numbers = #tpu.dot_dimension_numbers<[1], [0], [0], [1], [0, 0, 1, 1], [], []>} : vector<2x256xbf16>, vector<256x128xbf16>, vector<2x128xf32> -> vector<2x128xf32>
    %324 = vector.broadcast %290 : vector<1x128xf32> to vector<2x128xf32>
    %325 = arith.addf %323, %324 : vector<2x128xf32>
    %cst_145 = arith.constant 0.000000e+00 : f32
    %326 = vector.broadcast %cst_145 : f32 to vector<2x128xf32>
    %327 = arith.maximumf %325, %326 : vector<2x128xf32>
    %328 = arith.truncf %327 : vector<2x128xf32> to vector<2x128xbf16>
    %c0_146 = arith.constant 0 : index
    %c0_147 = arith.constant 0 : index
    %329 = vector.load %arg11[%c0_146, %c0_147] : memref<128x128xbf16, #tpu.memory_space<vmem>>, vector<128x128xbf16>
    %cst_148 = arith.constant dense<0.000000e+00> : vector<2x128xf32>
    %330 = tpu.matmul %328, %329, %cst_148 {dimension_numbers = #tpu.dot_dimension_numbers<[1], [0], [0], [1], [0, 0, 1, 1], [], []>} : vector<2x128xbf16>, vector<128x128xbf16>, vector<2x128xf32> -> vector<2x128xf32>
    %331 = vector.broadcast %291 : vector<1x128xf32> to vector<2x128xf32>
    %332 = arith.addf %330, %331 : vector<2x128xf32>
    %c0_149 = arith.constant 0 : index
    %c0_150 = arith.constant 0 : index
    %333 = vector.load %arg13[%c0_149, %c0_150] : memref<2x128xf32, #tpu.memory_space<vmem>>, vector<2x128xf32>
    tpu.vector_store %arg13[%c0_149, %c0_150], %332 {strides = array<i32>} : memref<2x128xf32, #tpu.memory_space<vmem>>, vector<2x128xf32>,
    return
  }
}

</mosaic_0001>

<bundles_post_ra>
// kernel: vit_for_regression.1
= control target key start
LH: loop header
LB: loop body
LE: loop exit
PB: predicated region body
PF: predicated region fallthrough
CT: control target
= control target key end

     0   :  { %s2542_s0 = inlined_call_operand.vmem [shape: bf16[10,192], index: 0, kind: input, shape index: {}]   ;;  %s2543_s1 = inlined_call_operand.vmem [shape: bf16[192,32], index: 1, kind: input, shape index: {}]   ;;  %s2544_s2 = inlined_call_operand.vmem [shape: f32[10,32], index: 2, kind: input, shape index: {}]   ;;  %s2545_s3 = inlined_call_operand.vmem [shape: f32[10,10], index: 3, kind: input, shape index: {}]   ;;  %s2546_s4 = inlined_call_operand.vmem [shape: bf16[2,32,96], index: 4, kind: input, shape index: {}]   ;;  %s2547_s5 = inlined_call_operand.vmem [shape: bf16[2,32,32], index: 5, kind: input, shape index: {}]   ;;  %s2548_s6 = inlined_call_operand.vmem [shape: bf16[2,32,128], index: 6, kind: input, shape index: {}]   ;;  %s2549_s7 = inlined_call_operand.vmem [shape: bf16[2,128,32], index: 7, kind: input, shape index: {}]   ;;  %s2550_s8 = inlined_call_operand.vmem [shape: f32[2,8,128], index: 8, kind: input, shape index: {}]   ;;  %s2551_s9 = inlined_call_operand.vmem [shape: bf16[32,256], index: 9, kind: input, shape index: {}]   ;;  %s2552_s10 = inlined_call_operand.vmem [shape: bf16[256,128], index: 10, kind: input, shape index: {}]   ;;  %s2553_s11 = inlined_call_operand.vmem [shape: bf16[128,128], index: 11, kind: input, shape index: {}]   ;;  %s2554_s12 = inlined_call_operand.vmem [shape: f32[4,256], index: 12, kind: input, shape index: {}]   ;;  %s2555_s13 = inlined_call_operand.hbm [shape: f32[2,128], index: 13, kind: output, shape index: {}]  }
   0x1   :  { %v1823_v0 = vld [vmem:[%s2543_s1 + $0x38] sm:$0xff]  ;;  %v1822_v2 = vld [vmem:[%s2543_s1 + $0x30] sm:$0xff]  ;;  %v1821_v4 = vld [vmem:[%s2543_s1 + $0x28] sm:$0xff] }
   0x2   :  { %v1827_v1 = vld [vmem:[%s2543_s1 + $0x58] sm:$0xff]  ;;  %159 = vmatpush.bf16.msra.mxu0 %v1823_v0  ;;  %v1826_v3 = vld [vmem:[%s2543_s1 + $0x50] sm:$0xff]  ;;  %v1825_v5 = vld [vmem:[%s2543_s1 + $0x48] sm:$0xff] }
   0x3   :  { %177 = vmatpush.bf16.msra.mxu1 %v1827_v1  ;;  %v1820_v6 = vld [vmem:[%s2543_s1 + $0x20] sm:$0xff]  ;;  %v1484_v9 = vld [vmem:[%s2542_s0 + $0x8] sm:$0x10] }
   0x4   :  { %v1824_v7 = vld [vmem:[%s2543_s1 + $0x40] sm:$0xff] }
   0x5   :  { %v1814_v8 = vld [vmem:[%s2542_s0 + $0x4] sm:$0xf] }
   0x6   :  { %160 = vmatpush.bf16.msra.mxu0 %v1822_v2 }
   0x7   :  { %178 = vmatpush.bf16.msra.mxu1 %v1826_v3 }
   0xa   :  { %161 = vmatpush.bf16.msra.mxu0 %v1821_v4 }
   0xb   :  { %179 = vmatpush.bf16.msra.mxu1 %v1825_v5 }
   0xc   :  { %18 = vsyncpa [#allocation3], 0  ;;  %v1819_v10 = vld [vmem:[%s2543_s1 + $0x18] sm:$0xff]  ;;  %v1487_v11 = vor.u32 %v1814_v8, %v1484_v9  ;;  %vm155_vm0 = vcmask 523264   ;;  %v1818_v12 = vld [vmem:[%s2543_s1 + $0x10] sm:$0xff]  ;;  %vm197_vm1 = vcmask 261120  }
   0xd   :  { %v1817_v13 = vld [vmem:[%s2543_s1 + $0x8] sm:$0xff]  ;;  %v1816_v14 = vld [vmem:[%s2543_s1] sm:$0xff]  ;;  %vm201_vm2 = vcmask 254976   ;;  %v2007_v30 = vmov 32.0   ;;  %s2008_s17 = smov 64   ;;  %s2009_s18 = smov 96  }
   0xe   :  { %162 = vmatpush.bf16.msra.mxu0 %v1820_v6  ;;  %v1482_v15 = vld [vmem:[%s2542_s0] sm:$0xf]  ;;  %v1815_v16 = vld [vmem:[%s2542_s0 + $0x4] sm:$0x10]  ;;  %1921 = vrcp.f32 %v2007_v30  ;;  %vm295_vm10 = vcmask 130048   ;;  %vm346_vm11 = vcmask 1044480  }
   0xf   :  { %180 = vmatpush.bf16.msra.mxu1 %v1824_v7  ;;  %v1483_v17 = vor.u32 %v1815_v16, %v1482_v15  ;;  %v72_v18 = vld [vmem:[%s2544_s2] sm:$0xff]  ;;  %v73_v24 = vld [vmem:[%s2544_s2 + $0x8] sm:$0x3]  ;;  %vm316_vm12 = vcmask 80896   ;;  %vm320_vm13 = vcmask 74752   ;;  %s2011_s23 = smov 80  }
  0x10   :  { %v1829_v47 = vld [vmem:[%s2546_s4 + $0x8] sm:$0xff]  ;;  %v1828_v49 = vld [vmem:[%s2546_s4] sm:$0xff]  ;;  %s2012_s24 = smov 48   ;;  %s2013_s0 = smov 16  }
  0x11   :  { %v1902_v4 = vld [vmem:[%s2550_s8] ss:$0 sm:$0xff]  ;;  %v1903_v9 = vld [vmem:[%s2550_s8 + $0x1] ss:$0 sm:$0xff]  ;;  %v1904_v15 = vld [vmem:[%s2550_s8 + $0x4] ss:$0 sm:$0xff] }
  0x12   :  { %163 = vmatpush.bf16.msra.mxu0 %v1819_v10  ;;  %1536 = vmatmul.msk.bf16.vlgmr.msra.gmra.mxu1 %vm155_vm0, %v1487_v11  ;;  %v2193_v30 = vld [vmem:[%s2545_s3 + $0x8] sm:$0x3]  ;;  %s1471_s22 = sshll.u32 %s2555_s13, 4  ;;  %s1472_s22 = int_to_ptr.hbm [resolvable:$true] %s1471_s22 }
  0x13   :  { %283 = vmatpush.bf16.msrb.mxu1 %v1829_v47 }
  0x14   :  { %v1922_v31 = vpop.eup %1921 }
  0x15   :  { %v206_v32 = vmul.f32 32.0, %v1922_v31  ;;  %vm210_vm3 = vweird.f32 %v1922_v31 }
  0x16   :  { %164 = vmatpush.bf16.msra.mxu0 %v1818_v12 }
  0x17   :  { %v207_v33 = vsub.f32 1.0, %v206_v32  ;;  %284 = vmatpush.bf16.msrb.mxu1 %v1828_v49 }
  0x19   :  { %v208_v34 = vmul.f32 %v1922_v31, %v207_v33 }
  0x1a   :  { %165 = vmatpush.bf16.msra.mxu0 %v1817_v13 }
  0x1b   :  { %v209_v35 = vadd.f32 %v1922_v31, %v208_v34 }
  0x1d   :  { %v2147_v36 = vsel %vm210_vm3, %v1922_v31, %v209_v35 }
  0x1e   :  { %166 = vmatpush.bf16.msra.mxu0 %v1816_v14 }
  0x21   :  { %167 = vmatmul.bf16.vlgmr.msra.gmra.mxu0 %v1483_v17 }
  0x8f   :  { %v182_v19 = vpop.f32.mrf.mxu1 }
  0x97   :  { %v184_v27 = vpop.f32.mrf.mxu1 }
  0x9e   :  { %v168_v20 = vpop.f32.mrf.mxu0 }
  0x9f   :  { %v169_v21 = vadd.f32 %v168_v20, %v72_v18 }
  0xa1   :  { %v2136_v22 = vadd.f32 %v182_v19, %v169_v21 }
  0xa3   :  { %v198_v23 = vsel %vm197_vm1, %v2136_v22, 0.0 }
  0xa4   :  { %199 = vadd.xlane.f32.xlu0 %v198_v23 }
  0xa6   :  { %v170_v25 = vpop.f32.mrf.mxu0 }
  0xa7   :  { %v171_v26 = vadd.f32 %v170_v25, %v73_v24  ;;  %v2186_v25 = vld [vmem:[%s2545_s3] sm:$0xff]  ;;  %s2010_s3 = smov 112  }
  0xa9   :  { %v2143_v28 = vadd.f32 %v184_v27, %v171_v26 }
  0xab   :  { %v202_v29 = vsel %vm201_vm2, %v2143_v28, 0.0 }
  0xac   :  { %203 = vadd.xlane.f32.xlu0 %v202_v29 }
 0x117   :  { %v200_v37 = vpop.xlane.xlu0 %199 }
 0x118   :  { %v212_v38 = vmul.f32 %v2147_v36, %v200_v37 }
 0x11a   :  { %v214_v39 = vsub.f32 %v2136_v22, %v212_v38 }
 0x11c   :  { %v216_v40 = vmul.f32 %v214_v39, %v214_v39 }
 0x11e   :  { %v218_v41 = vsel %vm197_vm1, %v216_v40, 0.0 }
 0x11f   :  { %219 = vadd.xlane.f32.xlu1 %v218_v41  ;;  %v204_v42 = vpop.xlane.xlu0 %203 }
 0x120   :  { %v213_v43 = vmul.f32 %v2147_v36, %v204_v42 }
 0x122   :  { %v215_v44 = vsub.f32 %v2143_v28, %v213_v43 }
 0x124   :  { %v217_v45 = vmul.f32 %v215_v44, %v215_v44 }
 0x126   :  { %v221_v46 = vsel %vm201_vm2, %v217_v45, 0.0 }
 0x127   :  { %222 = vadd.xlane.f32.xlu1 %v221_v46 }
 0x192   :  { %v220_v48 = vpop.xlane.xlu1 %219 }
 0x193   :  { %v224_v50 = vmul.f32 %v220_v48, %v2147_v36 }
 0x195   :  { %v226_v51 = vadd.f32 1e-12, %v224_v50 }
 0x197   :  { %1923 = vrsqrt.f32 %v226_v51  ;;  %vm234_vm5 = vweird.f32 %v226_v51 }
 0x19a   :  { %v223_v52 = vpop.xlane.xlu1 %222 }
 0x19b   :  { %v225_v53 = vmul.f32 %v223_v52, %v2147_v36 }
 0x19d   :  { %v1924_v54 = vpop.eup %1923  ;;  %v227_v55 = vadd.f32 1e-12, %v225_v53 }
 0x19e   :  { %v229_v56 = vmul.f32 %v1924_v54, %v226_v51  ;;  %vm235_vm4 = vweird.f32 %v1924_v54 }
 0x19f   :  { %1925 = vrsqrt.f32 %v227_v55  ;;  %vm236_vm6 = vmor %vm234_vm5, %vm235_vm4  ;;  %vm244_vm8 = vweird.f32 %v227_v55 }
 0x1a0   :  { %v230_v57 = vmul.f32 %v1924_v54, %v229_v56 }
 0x1a2   :  { %v231_v58 = vmul.f32 0.5, %v230_v57 }
 0x1a4   :  { %v232_v59 = vsub.f32 1.5, %v231_v58 }
 0x1a5   :  { %v1926_v60 = vpop.eup %1925 }
 0x1a6   :  { %v233_v61 = vmul.f32 %v1924_v54, %v232_v59  ;;  %v239_v62 = vmul.f32 %v1926_v60, %v227_v55  ;;  %vm245_vm7 = vweird.f32 %v1926_v60 }
 0x1a7   :  { %vm246_vm9 = vmor %vm244_vm8, %vm245_vm7 }
 0x1a8   :  { %v240_v63 = vmul.f32 %v1926_v60, %v239_v62  ;;  %v237_v0 = vsel %vm236_vm6, %v1924_v54, %v233_v61 }
 0x1a9   :  { %v248_v3 = vmul.f32 %v237_v0, %v214_v39 }
 0x1aa   :  { %v241_v1 = vmul.f32 0.5, %v240_v63 }
 0x1ab   :  { %v251_v8 = vmul.f32 %v1902_v4, %v248_v3 }
 0x1ac   :  { %v242_v2 = vsub.f32 1.5, %v241_v1 }
 0x1ad   :  { %v254_v11 = vadd.f32 %v1903_v9, %v251_v8 }
 0x1ae   :  { %v243_v5 = vmul.f32 %v1926_v60, %v242_v2 }
 0x1b0   :  { %v247_v6 = vsel %vm246_vm9, %v1926_v60, %v243_v5 }
 0x1b1   :  { %v249_v7 = vmul.f32 %v247_v6, %v215_v44 }
 0x1b3   :  { %v252_v10 = vmul.f32 %v1902_v4, %v249_v7 }
 0x1b5   :  { %v255_v12 = vadd.f32 %v1903_v9, %v252_v10 }
 0x1b7   :  { %v256_v13 = vpack.c.bf16 %v255_v12, %v254_v11 }
 0x1b9   :  { %1545 = vmatmul.msk.bf16.vlgmr.msrb.gmra.mxu1 %vm197_vm1, %v256_v13 }
 0x236   :  { %v286_v14 = vpop.f32.mrf.mxu1 }
 0x237   :  { %v287_v17 = vadd.f32 %v1904_v15, %v286_v14 }
 0x23e   :  { %v288_v16 = vpop.f32.mrf.mxu1 }
 0x23f   :  { %v289_v18 = vadd.f32 %v1904_v15, %v288_v16 }
 0x241   :  { %v2173_v19 = vpack.c.bf16 %v289_v18, %v287_v17  ;;  %v1831_v18 = vld [vmem:[%s2547_s5 + $0x8] sm:$0xff] }
 0x243   :  { %341 = vrot.lane.b32.xlu1 %v2173_v19, %s2008_s17  ;;  %293 = vrot.lane.b32.xlu2 %v2173_v19, %s2009_s18 }
 0x29d   :  { %v294_v20 = vpop.permute.xlu2 %293 }
 0x29e   :  { %v300_v21 = vsel %vm295_vm10, %v294_v20, 0 }
 0x29f   :  { %309 = vmatpush.bf16.xpose.msra.mxu3 %v300_v21 }
 0x2a6   :  { %1546 = vmatmul.msk.bf16.vlgmr.msra.gmra.mxu3 %vm295_vm10, %v2173_v19 }
 0x2b5   :  { %v342_v23 = vpop.permute.xlu1 %341 }
 0x2b6   :  { %v348_v24 = vsel %vm346_vm11, %v342_v23, 0  ;;  %v1830_v23 = vld [vmem:[%s2547_s5] sm:$0xff] }
 0x2b7   :  { %357 = vmatpush.bf16.msra.mxu2 %v348_v24 }
 0x329   :  { %v311_v26 = vpop.f32.mrf.mxu3 }
 0x32a   :  { %v312_v27 = vadd.f32 %v311_v26, %v2186_v25 }
 0x32c   :  { %v317_v29 = vsel %vm316_vm12, %v312_v27, -inf }
 0x32d   :  { %318 = vmax.xlane.f32.xlu2 %v317_v29 }
 0x331   :  { %v313_v31 = vpop.f32.mrf.mxu3 }
 0x332   :  { %v314_v32 = vadd.f32 %v313_v31, %v2193_v30 }
 0x334   :  { %v321_v33 = vsel %vm320_vm13, %v314_v32, -inf }
 0x335   :  { %322 = vmax.xlane.f32.xlu0 %v321_v33  ;;  %v1905_v33 = vld [vmem:[%s2550_s8 + $0x5] ss:$0 sm:$0xff] }
 0x3a0   :  { %v319_v34 = vpop.xlane.xlu2 %318 }
 0x3a1   :  { %v324_v35 = vsub.f32 %v312_v27, %v319_v34 }
 0x3a3   :  { %v326_v37 = vmul.f32 1.442695, %v324_v35 }
 0x3a5   :  { %1927 = vpow2.f32 %v326_v37 }
 0x3a8   :  { %v323_v38 = vpop.xlane.xlu0 %322 }
 0x3a9   :  { %v325_v39 = vsub.f32 %v314_v32, %v323_v38 }
 0x3ab   :  { %v1928_v40 = vpop.eup %1927  ;;  %v328_v41 = vmul.f32 1.442695, %v325_v39 }
 0x3ac   :  { %v330_v42 = vsel %vm316_vm12, %v1928_v40, 0.0 }
 0x3ad   :  { %1929 = vpow2.f32 %v328_v41  ;;  %331 = vadd.xlane.f32.xlu1 %v330_v42 }
 0x3b3   :  { %v1930_v43 = vpop.eup %1929 }
 0x3b4   :  { %v333_v44 = vsel %vm320_vm13, %v1930_v43, 0.0 }
 0x3b5   :  { %334 = vadd.xlane.f32.xlu0 %v333_v44 }
 0x3c6   :  { %364 = vrot.lane.b32.xlu1 %v2173_v19, %s2010_s3 }
 0x3c9   :  { %366 = vrot.lane.b32.xlu0 %v2173_v19, %s2011_s23 }
 0x420   :  { %v332_v45 = vpop.xlane.xlu1 %331 }
 0x421   :  { %1931 = vrcp.f32 %v332_v45 }
 0x427   :  { %v1932_v47 = vpop.eup %1931 }
 0x428   :  { %v335_v46 = vpop.xlane.xlu0 %334  ;;  %v338_v49 = vmul.f32 %v1932_v47, %v1928_v40 }
 0x429   :  { %1933 = vrcp.f32 %v335_v46 }
 0x42f   :  { %v1934_v48 = vpop.eup %1933 }
 0x430   :  { %v339_v50 = vmul.f32 %v1934_v48, %v1930_v43 }
 0x432   :  { %v340_v51 = vpack.c.bf16 %v339_v50, %v338_v49 }
 0x434   :  { %1547 = vmatmul.msk.bf16.vlgmr.msra.gmra.mxu2 %vm316_vm12, %v340_v51  ;;  %v1833_v51 = vld [vmem:[%s2548_s6 + $0x8] sm:$0xff] }
 0x435   :  { %557 = vmatpush.bf16.msrb.mxu3 %v1833_v51 }
 0x438   :  { %v365_v54 = vpop.permute.xlu1 %364 }
 0x43b   :  { %v367_v52 = vpop.permute.xlu0 %366 }
 0x43c   :  { %v372_v53 = vsel %vm295_vm10, %v367_v52, 0 }
 0x43d   :  { %381 = vmatpush.bf16.xpose.msrb.mxu2 %v372_v53  ;;  %v1832_v53 = vld [vmem:[%s2548_s6] sm:$0xff] }
 0x43e   :  { %558 = vmatpush.bf16.msrb.mxu3 %v1832_v53 }
 0x444   :  { %1548 = vmatmul.msk.bf16.vlgmr.msrb.gmra.mxu2 %vm295_vm10, %v365_v54 }
 0x445   :  { %470 = vmatpush.bf16.msra.mxu2 %v1831_v18  ;;  %v1841_v18 = vld [vmem:[%s2549_s7 + $0x38] sm:$0xff] }
 0x446   :  { %649 = vmatpush.bf16.msrb.mxu0 %v1841_v18 }
 0x449   :  { %471 = vmatpush.bf16.msra.mxu2 %v1830_v23  ;;  %v1837_v23 = vld [vmem:[%s2549_s7 + $0x18] sm:$0xff] }
 0x4b7   :  { %v359_v55 = vpop.f32.mrf.mxu2 }
 0x4bf   :  { %v361_v56 = vpop.f32.mrf.mxu2 }
 0x4c7   :  { %v383_v57 = vpop.f32.mrf.mxu2 }
 0x4c8   :  { %v384_v58 = vadd.f32 %v383_v57, %v2186_v25 }
 0x4ca   :  { %v388_v59 = vsel %vm316_vm12, %v384_v58, -inf }
 0x4cb   :  { %389 = vmax.xlane.f32.xlu2 %v388_v59 }
 0x4cf   :  { %v385_v60 = vpop.f32.mrf.mxu2 }
 0x4d0   :  { %v386_v61 = vadd.f32 %v385_v60, %v2193_v30 }
 0x4d2   :  { %v391_v62 = vsel %vm320_vm13, %v386_v61, -inf }
 0x4d3   :  { %392 = vmax.xlane.f32.xlu0 %v391_v62 }
 0x53e   :  { %v390_v63 = vpop.xlane.xlu2 %389 }
 0x53f   :  { %v394_v0 = vsub.f32 %v384_v58, %v390_v63 }
 0x541   :  { %v396_v1 = vmul.f32 1.442695, %v394_v0 }
 0x543   :  { %1935 = vpow2.f32 %v396_v1 }
 0x546   :  { %v393_v2 = vpop.xlane.xlu0 %392 }
 0x547   :  { %v395_v3 = vsub.f32 %v386_v61, %v393_v2 }
 0x549   :  { %v1936_v4 = vpop.eup %1935  ;;  %v398_v5 = vmul.f32 1.442695, %v395_v3 }
 0x54a   :  { %v400_v6 = vsel %vm316_vm12, %v1936_v4, 0.0 }
 0x54b   :  { %1937 = vpow2.f32 %v398_v5  ;;  %401 = vadd.xlane.f32.xlu1 %v400_v6 }
 0x551   :  { %v1938_v7 = vpop.eup %1937 }
 0x552   :  { %v403_v8 = vsel %vm320_vm13, %v1938_v7, 0.0 }
 0x553   :  { %404 = vadd.xlane.f32.xlu2 %v403_v8  ;;  %v1906_v8 = vld [vmem:[%s2550_s8 + $0x2] ss:$0 sm:$0xff] }
 0x56b   :  { %411 = vrot.lane.b32.xlu2 %v2173_v19, %s2012_s24 }
 0x5be   :  { %v402_v9 = vpop.xlane.xlu1 %401 }
 0x5bf   :  { %1939 = vrcp.f32 %v402_v9 }
 0x5c5   :  { %v1940_v11 = vpop.eup %1939 }
 0x5c6   :  { %v405_v10 = vpop.xlane.xlu2 %404  ;;  %v408_v13 = vmul.f32 %v1940_v11, %v1936_v4 }
 0x5c7   :  { %1941 = vrcp.f32 %v405_v10 }
 0x5cd   :  { %v1942_v12 = vpop.eup %1941 }
 0x5ce   :  { %v409_v14 = vmul.f32 %v1942_v12, %v1938_v7  ;;  %v412_v15 = vpop.permute.xlu2 %411 }
 0x5cf   :  { %v417_v16 = vsel %vm346_vm11, %v412_v15, 0 }
 0x5d0   :  { %v410_v17 = vpack.c.bf16 %v409_v14, %v408_v13  ;;  %426 = vmatpush.bf16.msra.mxu1 %v417_v16  ;;  %v1907_v13 = vld [vmem:[%s2550_s8 + $0x3] ss:$0 sm:$0xff] }
 0x5d3   :  { %1549 = vmatmul.msk.bf16.vlgmr.msra.gmra.mxu1 %vm316_vm12, %v410_v17 }
 0x650   :  { %v428_v19 = vpop.f32.mrf.mxu1 }
 0x658   :  { %v430_v20 = vpop.f32.mrf.mxu1 }
 0x659   :  { %v1892_v21 = vpack.i.bf16 %v430_v20, %v428_v19  ;;  %v1840_v19 = vld [vmem:[%s2549_s7 + $0x30] sm:$0xff]  ;;  %v1839_v20 = vld [vmem:[%s2549_s7 + $0x28] sm:$0xff] }
 0x65a   :  { %650 = vmatpush.bf16.msrb.mxu0 %v1840_v19 }
 0x65b   :  { %1893 = vrot.lane.b32.xlu2 %v1892_v21, %s2013_s0  ;;  %v1838_v21 = vld [vmem:[%s2549_s7 + $0x20] sm:$0xff] }
 0x65e   :  { %651 = vmatpush.bf16.msrb.mxu0 %v1839_v20 }
 0x662   :  { %652 = vmatpush.bf16.msrb.mxu0 %v1838_v21 }
 0x666   :  { %653 = vmatpush.bf16.msrb.mxu0 %v1837_v23 }
 0x6b5   :  { %v1894_v24 = vpop.permute.xlu2 %1893 }
 0x6b6   :  { %v1896_v26 = vunpack.i.h.bf16 %v1894_v24  ;;  %v1895_v27 = vunpack.i.l.bf16 %v1894_v24  ;;  %v1836_v24 = vld [vmem:[%s2549_s7 + $0x10] sm:$0xff] }
 0x6b7   :  { %654 = vmatpush.bf16.msrb.mxu0 %v1836_v24 }
 0x6b8   :  { %v442_v29 = vsel %vm295_vm10, %v361_v56, %v1896_v26  ;;  %v441_v31 = vsel %vm295_vm10, %v359_v55, %v1895_v27  ;;  %v1835_v26 = vld [vmem:[%s2549_s7 + $0x8] sm:$0xff]  ;;  %v1908_v27 = vld [vmem:[%s2550_s8 + $0x6] ss:$0 sm:$0xff] }
 0x6b9   :  { %v443_v32 = vpack.c.bf16 %v442_v29, %v441_v31  ;;  %v1834_v29 = vld [vmem:[%s2549_s7] sm:$0xff] }
 0x6bb   :  { %1558 = vmatmul.msk.bf16.vlgmr.msra.gmra.mxu2 %vm197_vm1, %v443_v32  ;;  %655 = vmatpush.bf16.msrb.mxu0 %v1835_v26 }
 0x6bf   :  { %656 = vmatpush.bf16.msrb.mxu0 %v1834_v29 }
 0x73e   :  { %v473_v34 = vpop.f32.mrf.mxu2 }
 0x73f   :  { %v474_v35 = vadd.f32 %v1905_v33, %v473_v34 }
 0x741   :  { %v2230_v37 = vadd.f32 %v474_v35, %v2136_v22 }
 0x743   :  { %v480_v38 = vsel %vm197_vm1, %v2230_v37, 0.0 }
 0x744   :  { %481 = vadd.xlane.f32.xlu0 %v480_v38 }
 0x746   :  { %v475_v39 = vpop.f32.mrf.mxu2 }
 0x747   :  { %v476_v40 = vadd.f32 %v1905_v33, %v475_v39 }
 0x749   :  { %v2235_v41 = vadd.f32 %v476_v40, %v2143_v28 }
 0x74b   :  { %v483_v42 = vsel %vm201_vm2, %v2235_v41, 0.0 }
 0x74c   :  { %484 = vadd.xlane.f32.xlu2 %v483_v42 }
 0x7b7   :  { %v482_v43 = vpop.xlane.xlu0 %481 }
 0x7b8   :  { %v486_v44 = vmul.f32 %v482_v43, %v2147_v36 }
 0x7ba   :  { %v488_v45 = vsub.f32 %v2230_v37, %v486_v44 }
 0x7bc   :  { %v490_v22 = vmul.f32 %v488_v45, %v488_v45 }
 0x7be   :  { %v492_v46 = vsel %vm197_vm1, %v490_v22, 0.0 }
 0x7bf   :  { %v485_v47 = vpop.xlane.xlu2 %484  ;;  %493 = vadd.xlane.f32.xlu1 %v492_v46 }
 0x7c0   :  { %v487_v48 = vmul.f32 %v485_v47, %v2147_v36 }
 0x7c2   :  { %v489_v49 = vsub.f32 %v2235_v41, %v487_v48 }
 0x7c4   :  { %v491_v28 = vmul.f32 %v489_v49, %v489_v49 }
 0x7c6   :  { %v495_v50 = vsel %vm201_vm2, %v491_v28, 0.0 }
 0x7c7   :  { %496 = vadd.xlane.f32.xlu0 %v495_v50 }
 0x832   :  { %v494_v52 = vpop.xlane.xlu1 %493 }
 0x833   :  { %v498_v54 = vmul.f32 %v494_v52, %v2147_v36 }
 0x835   :  { %v500_v55 = vadd.f32 1e-12, %v498_v54 }
 0x837   :  { %1943 = vrsqrt.f32 %v500_v55  ;;  %vm508_vm15 = vweird.f32 %v500_v55 }
 0x83a   :  { %v497_v56 = vpop.xlane.xlu0 %496 }
 0x83b   :  { %v499_v57 = vmul.f32 %v497_v56, %v2147_v36 }
 0x83d   :  { %v1944_v58 = vpop.eup %1943  ;;  %v501_v59 = vadd.f32 1e-12, %v499_v57 }
 0x83e   :  { %v503_v60 = vmul.f32 %v1944_v58, %v500_v55  ;;  %vm509_vm14 = vweird.f32 %v1944_v58  ;;  %v1909_v55 = vld [vmem:[%s2550_s8 + $0x7] ss:$0 sm:$0xff] }
 0x83f   :  { %1945 = vrsqrt.f32 %v501_v59  ;;  %vm510_vm0 = vmor %vm508_vm15, %vm509_vm14  ;;  %vm518_vm4 = vweird.f32 %v501_v59 }
 0x840   :  { %v504_v61 = vmul.f32 %v1944_v58, %v503_v60 }
 0x842   :  { %v505_v62 = vmul.f32 0.5, %v504_v61 }
 0x844   :  { %v506_v63 = vsub.f32 1.5, %v505_v62 }
 0x845   :  { %v1946_v0 = vpop.eup %1945 }
 0x846   :  { %v507_v1 = vmul.f32 %v1944_v58, %v506_v63  ;;  %v513_v2 = vmul.f32 %v1946_v0, %v501_v59  ;;  %vm519_vm3 = vweird.f32 %v1946_v0 }
 0x847   :  { %vm520_vm5 = vmor %vm518_vm4, %vm519_vm3 }
 0x848   :  { %v514_v3 = vmul.f32 %v1946_v0, %v513_v2  ;;  %v511_v4 = vsel %vm510_vm0, %v1944_v58, %v507_v1 }
 0x849   :  { %v522_v7 = vmul.f32 %v511_v4, %v488_v45 }
 0x84a   :  { %v515_v5 = vmul.f32 0.5, %v514_v3 }
 0x84b   :  { %v525_v12 = vmul.f32 %v1906_v8, %v522_v7 }
 0x84c   :  { %v516_v6 = vsub.f32 1.5, %v515_v5 }
 0x84d   :  { %v528_v15 = vadd.f32 %v1907_v13, %v525_v12 }
 0x84e   :  { %v517_v9 = vmul.f32 %v1946_v0, %v516_v6 }
 0x850   :  { %v521_v10 = vsel %vm520_vm5, %v1946_v0, %v517_v9 }
 0x851   :  { %v523_v11 = vmul.f32 %v521_v10, %v489_v49 }
 0x853   :  { %v526_v14 = vmul.f32 %v1906_v8, %v523_v11  ;;  %v1843_v8 = vld [vmem:[%s2546_s4 + $0x18] sm:$0xff]  ;;  %v1842_v11 = vld [vmem:[%s2546_s4 + $0x10] sm:$0xff] }
 0x854   :  { %752 = vmatpush.bf16.msrb.mxu1 %v1843_v8 }
 0x855   :  { %v529_v16 = vadd.f32 %v1907_v13, %v526_v14 }
 0x857   :  { %v530_v17 = vpack.c.bf16 %v529_v16, %v528_v15 }
 0x858   :  { %753 = vmatpush.bf16.msrb.mxu1 %v1842_v11 }
 0x859   :  { %1567 = vmatmul.msk.bf16.vlgmr.msrb.gmra.mxu3 %vm197_vm1, %v530_v17 }
 0x8dc   :  { %v560_v31 = vpop.f32.mrf.mxu3 }
 0x8dd   :  { %v561_v32 = vadd.f32 %v1908_v27, %v560_v31 }
 0x8df   :  { %v565_v33 = vmul.f32 %v561_v32, %v561_v32 }
 0x8e1   :  { %v567_v34 = vmul.f32 %v565_v33, %v561_v32 }
 0x8e3   :  { %v569_v35 = vmul.f32 0.044715, %v567_v34 }
 0x8e4   :  { %v562_v38 = vpop.f32.mrf.mxu3 }
 0x8e5   :  { %v571_v39 = vadd.f32 %v569_v35, %v561_v32  ;;  %v563_v40 = vadd.f32 %v1908_v27, %v562_v38  ;;  %v1911_v38 = vld [vmem:[%s2550_s8 + $0x9] ss:$0 sm:$0xff] }
 0x8e7   :  { %v573_v42 = vmul.f32 0.7978846, %v571_v39  ;;  %v566_v43 = vmul.f32 %v563_v40, %v563_v40 }
 0x8e9   :  { %v568_v44 = vmul.f32 %v566_v43, %v563_v40  ;;  %1947 = vtanh.f32 %v573_v42 }
 0x8eb   :  { %v570_v45 = vmul.f32 0.044715, %v568_v44 }
 0x8ed   :  { %v572_v22 = vadd.f32 %v570_v45, %v563_v40 }
 0x8ef   :  { %v574_v46 = vmul.f32 0.7978846, %v572_v22  ;;  %v1948_v47 = vpop.eup %1947 }
 0x8f0   :  { %v577_v48 = vadd.f32 1.0, %v1948_v47 }
 0x8f1   :  { %1949 = vtanh.f32 %v574_v46  ;;  %v1912_v46 = vld [vmem:[%s2550_s8 + $0xc] ss:$0 sm:$0xff] }
 0x8f2   :  { %v579_v50 = vmul.f32 0.5, %v577_v48 }
 0x8f4   :  { %v581_v52 = vmul.f32 %v579_v50, %v561_v32  ;;  %v1910_v32 = vld [vmem:[%s2550_s8 + $0x8] ss:$0 sm:$0xff] }
 0x8f7   :  { %v1950_v49 = vpop.eup %1949 }
 0x8f8   :  { %v578_v28 = vadd.f32 1.0, %v1950_v49 }
 0x8fa   :  { %v580_v51 = vmul.f32 0.5, %v578_v28 }
 0x8fc   :  { %v582_v53 = vmul.f32 %v580_v51, %v563_v40 }
 0x8fe   :  { %v583_v54 = vpack.c.bf16 %v582_v53, %v581_v52 }
 0x900   :  { %657 = vmatmul.bf16.vlgmr.msrb.gmra.mxu0 %v583_v54 }
 0x97d   :  { %v658_v56 = vpop.f32.mrf.mxu0 }
 0x97e   :  { %v659_v57 = vadd.f32 %v1909_v55, %v658_v56 }
 0x980   :  { %v2291_v58 = vadd.f32 %v659_v57, %v2230_v37 }
 0x982   :  { %v674_v59 = vsel %vm197_vm1, %v2291_v58, 0.0 }
 0x983   :  { %675 = vadd.xlane.f32.xlu1 %v674_v59 }
 0x985   :  { %v660_v60 = vpop.f32.mrf.mxu0 }
 0x986   :  { %v661_v61 = vadd.f32 %v1909_v55, %v660_v60 }
 0x988   :  { %v2296_v62 = vadd.f32 %v661_v61, %v2235_v41 }
 0x98a   :  { %v677_v63 = vsel %vm201_vm2, %v2296_v62, 0.0 }
 0x98b   :  { %678 = vadd.xlane.f32.xlu0 %v677_v63 }
 0x9f6   :  { %v676_v0 = vpop.xlane.xlu1 %675 }
 0x9f7   :  { %v680_v1 = vmul.f32 %v676_v0, %v2147_v36 }
 0x9f9   :  { %v682_v2 = vsub.f32 %v2291_v58, %v680_v1 }
 0x9fb   :  { %v684_v37 = vmul.f32 %v682_v2, %v682_v2 }
 0x9fd   :  { %v686_v3 = vsel %vm197_vm1, %v684_v37, 0.0 }
 0x9fe   :  { %v679_v4 = vpop.xlane.xlu0 %678  ;;  %687 = vadd.xlane.f32.xlu1 %v686_v3 }
 0x9ff   :  { %v681_v5 = vmul.f32 %v679_v4, %v2147_v36 }
 0xa01   :  { %v683_v6 = vsub.f32 %v2296_v62, %v681_v5 }
 0xa03   :  { %v685_v41 = vmul.f32 %v683_v6, %v683_v6 }
 0xa05   :  { %v689_v7 = vsel %vm201_vm2, %v685_v41, 0.0 }
 0xa06   :  { %690 = vadd.xlane.f32.xlu0 %v689_v7 }
 0xa71   :  { %v688_v9 = vpop.xlane.xlu1 %687 }
 0xa72   :  { %v692_v10 = vmul.f32 %v688_v9, %v2147_v36 }
 0xa74   :  { %v694_v12 = vadd.f32 1e-12, %v692_v10 }
 0xa76   :  { %1951 = vrsqrt.f32 %v694_v12  ;;  %vm702_vm7 = vweird.f32 %v694_v12 }
 0xa79   :  { %v691_v13 = vpop.xlane.xlu0 %690 }
 0xa7a   :  { %v693_v14 = vmul.f32 %v691_v13, %v2147_v36 }
 0xa7c   :  { %v1952_v15 = vpop.eup %1951  ;;  %v695_v16 = vadd.f32 1e-12, %v693_v14 }
 0xa7d   :  { %v697_v17 = vmul.f32 %v1952_v15, %v694_v12  ;;  %vm703_vm6 = vweird.f32 %v1952_v15 }
 0xa7e   :  { %1953 = vrsqrt.f32 %v695_v16  ;;  %vm704_vm8 = vmor %vm702_vm7, %vm703_vm6  ;;  %vm712_vm14 = vweird.f32 %v695_v16 }
 0xa7f   :  { %v698_v18 = vmul.f32 %v1952_v15, %v697_v17 }
 0xa81   :  { %v699_v19 = vmul.f32 0.5, %v698_v18 }
 0xa83   :  { %v700_v20 = vsub.f32 1.5, %v699_v19 }
 0xa84   :  { %v1954_v21 = vpop.eup %1953 }
 0xa85   :  { %v701_v23 = vmul.f32 %v1952_v15, %v700_v20  ;;  %v707_v24 = vmul.f32 %v1954_v21, %v695_v16  ;;  %vm713_vm9 = vweird.f32 %v1954_v21 }
 0xa86   :  { %vm714_vm15 = vmor %vm712_vm14, %vm713_vm9 }
 0xa87   :  { %v708_v26 = vmul.f32 %v1954_v21, %v707_v24  ;;  %v705_v27 = vsel %vm704_vm8, %v1952_v15, %v701_v23 }
 0xa88   :  { %v716_v33 = vmul.f32 %v705_v27, %v682_v2 }
 0xa89   :  { %v709_v29 = vmul.f32 0.5, %v708_v26 }
 0xa8a   :  { %v719_v39 = vmul.f32 %v1910_v32, %v716_v33 }
 0xa8b   :  { %v710_v31 = vsub.f32 1.5, %v709_v29 }
 0xa8c   :  { %v722_v43 = vadd.f32 %v1911_v38, %v719_v39 }
 0xa8d   :  { %v711_v34 = vmul.f32 %v1954_v21, %v710_v31 }
 0xa8f   :  { %v715_v35 = vsel %vm714_vm15, %v1954_v21, %v711_v34 }
 0xa90   :  { %v717_v40 = vmul.f32 %v715_v35, %v683_v6 }
 0xa92   :  { %v720_v42 = vmul.f32 %v1910_v32, %v717_v40 }
 0xa94   :  { %v723_v44 = vadd.f32 %v1911_v38, %v720_v42 }
 0xa96   :  { %v724_v45 = vpack.c.bf16 %v723_v44, %v722_v43 }
 0xa98   :  { %1620 = vmatmul.msk.bf16.vlgmr.msrb.gmra.mxu1 %vm197_vm1, %v724_v45 }
 0xb15   :  { %v755_v22 = vpop.f32.mrf.mxu1 }
 0xb16   :  { %v756_v48 = vadd.f32 %v1912_v46, %v755_v22  ;;  %v1845_v22 = vld [vmem:[%s2547_s5 + $0x18] sm:$0xff] }
 0xb1d   :  { %v757_v47 = vpop.f32.mrf.mxu1 }
 0xb1e   :  { %v758_v49 = vadd.f32 %v1912_v46, %v757_v47 }
 0xb20   :  { %v760_v28 = vpack.c.bf16 %v758_v49, %v756_v48  ;;  %v1844_v49 = vld [vmem:[%s2547_s5 + $0x10] sm:$0xff] }
 0xb22   :  { %762 = vrot.lane.b32.xlu2 %v760_v28, %s2009_s18  ;;  %829 = vrot.lane.b32.xlu0 %v760_v28, %s2010_s3 }
 0xb23   :  { %831 = vrot.lane.b32.xlu1 %v760_v28, %s2011_s23  ;;  %s2014_s23 = smov [#allocation2]  }
 0xb7c   :  { %v763_v50 = vpop.permute.xlu2 %762 }
 0xb7d   :  { %v768_v51 = vsel %vm295_vm10, %v763_v50, 0 }
 0xb7e   :  { %777 = vmatpush.bf16.xpose.msrb.mxu2 %v768_v51 }
 0xb85   :  { %1621 = vmatmul.msk.bf16.vlgmr.msrb.gmra.mxu2 %vm295_vm10, %v760_v28 }
 0xb94   :  { %v830_v54 = vpop.permute.xlu0 %829 }
 0xb95   :  { %v832_v52 = vpop.permute.xlu1 %831 }
 0xb96   :  { %v837_v53 = vsel %vm295_vm10, %v832_v52, 0 }
 0xb97   :  { %846 = vmatpush.bf16.xpose.msra.mxu1 %v837_v53 }
 0xb9e   :  { %1623 = vmatmul.msk.bf16.vlgmr.msra.gmra.mxu1 %vm295_vm10, %v830_v54 }
 0xc08   :  { %v779_v55 = vpop.f32.mrf.mxu2 }
 0xc09   :  { %v780_v56 = vadd.f32 %v779_v55, %v2186_v25 }
 0xc0b   :  { %v784_v57 = vsel %vm316_vm12, %v780_v56, -inf }
 0xc0c   :  { %785 = vmax.xlane.f32.xlu2 %v784_v57  ;;  %v1913_v57 = vld [vmem:[%s2550_s8 + $0xd] ss:$0 sm:$0xff] }
 0xc10   :  { %v781_v63 = vpop.f32.mrf.mxu2 }
 0xc11   :  { %v782_v0 = vadd.f32 %v781_v63, %v2193_v30 }
 0xc13   :  { %v787_v3 = vsel %vm320_vm13, %v782_v0, -inf }
 0xc1b   :  { %v848_v59 = vpop.f32.mrf.mxu1 }
 0xc1c   :  { %v849_v60 = vadd.f32 %v848_v59, %v2186_v25 }
 0xc1e   :  { %v853_v61 = vsel %vm316_vm12, %v849_v60, -inf }
 0xc1f   :  { %854 = vmax.xlane.f32.xlu0 %v853_v61 }
 0xc23   :  { %v850_v1 = vpop.f32.mrf.mxu1 }
 0xc24   :  { %v851_v2 = vadd.f32 %v850_v1, %v2193_v30 }
 0xc26   :  { %v856_v37 = vsel %vm320_vm13, %v851_v2, -inf }
 0xc27   :  { %857 = vmax.xlane.f32.xlu1 %v856_v37  ;;  %788 = vmax.xlane.f32.xlu0 %v787_v3 }
 0xc7f   :  { %v786_v4 = vpop.xlane.xlu2 %785 }
 0xc80   :  { %v790_v5 = vsub.f32 %v780_v56, %v786_v4 }
 0xc82   :  { %v792_v6 = vmul.f32 1.442695, %v790_v5 }
 0xc84   :  { %1955 = vpow2.f32 %v792_v6 }
 0xc8a   :  { %v1956_v25 = vpop.eup %1955 }
 0xc8b   :  { %v796_v41 = vsel %vm316_vm12, %v1956_v25, 0.0 }
 0xc8c   :  { %797 = vadd.xlane.f32.xlu2 %v796_v41 }
 0xc92   :  { %v855_v7 = vpop.xlane.xlu0 %854 }
 0xc93   :  { %v859_v8 = vsub.f32 %v849_v60, %v855_v7 }
 0xc95   :  { %v861_v9 = vmul.f32 1.442695, %v859_v8 }
 0xc97   :  { %1957 = vpow2.f32 %v861_v9 }
 0xc9a   :  { %v858_v10 = vpop.xlane.xlu1 %857  ;;  %v789_v30 = vpop.xlane.xlu0 %788 }
 0xc9b   :  { %v860_v11 = vsub.f32 %v851_v2, %v858_v10  ;;  %v791_v14 = vsub.f32 %v782_v0, %v789_v30 }
 0xc9d   :  { %v1958_v12 = vpop.eup %1957  ;;  %v863_v13 = vmul.f32 1.442695, %v860_v11  ;;  %v794_v16 = vmul.f32 1.442695, %v791_v14 }
 0xc9e   :  { %v865_v15 = vsel %vm316_vm12, %v1958_v12, 0.0 }
 0xc9f   :  { %1959 = vpow2.f32 %v863_v13  ;;  %866 = vadd.xlane.f32.xlu1 %v865_v15 }
 0xca0   :  { %1961 = vpow2.f32 %v794_v16 }
 0xca4   :  { %807 = vrot.lane.b32.xlu2 %v760_v28, %s2008_s17 }
 0xca5   :  { %v1960_v17 = vpop.eup %1959 }
 0xca6   :  { %v868_v18 = vsel %vm320_vm13, %v1960_v17, 0.0  ;;  %v1962_v19 = vpop.eup %1961 }
 0xca7   :  { %869 = vadd.xlane.f32.xlu0 %v868_v18  ;;  %v799_v20 = vsel %vm320_vm13, %v1962_v19, 0.0 }
 0xcaf   :  { %800 = vadd.xlane.f32.xlu0 %v799_v20 }
 0xcb8   :  { %876 = vrot.lane.b32.xlu1 %v760_v28, %s2012_s24 }
 0xcff   :  { %v798_v21 = vpop.xlane.xlu2 %797 }
 0xd07   :  { %v808_v23 = vpop.permute.xlu2 %807 }
 0xd08   :  { %v813_v24 = vsel %vm346_vm11, %v808_v23, 0 }
 0xd09   :  { %822 = vmatpush.bf16.msra.mxu3 %v813_v24 }
 0xd0d   :  { %936 = vmatpush.bf16.msrb.mxu3 %v1845_v22  ;;  %v1855_v22 = vld [vmem:[%s2549_s7 + $0x78] sm:$0xff] }
 0xd0e   :  { %1117 = vmatpush.bf16.msrb.mxu1 %v1855_v22  ;;  %v1865_v22 = vld [vmem:[%s2552_s10 + $0x28] sm:$0xff] }
 0xd11   :  { %937 = vmatpush.bf16.msrb.mxu3 %v1844_v49  ;;  %v1851_v49 = vld [vmem:[%s2549_s7 + $0x58] sm:$0xff] }
 0xd12   :  { %v867_v27 = vpop.xlane.xlu1 %866 }
 0xd1a   :  { %v870_v26 = vpop.xlane.xlu0 %869 }
 0xd1b   :  { %1963 = vrcp.f32 %v870_v26 }
 0xd1c   :  { %1965 = vrcp.f32 %v798_v21 }
 0xd1d   :  { %1967 = vrcp.f32 %v867_v27 }
 0xd21   :  { %v1964_v31 = vpop.eup %1963 }
 0xd22   :  { %v801_v29 = vpop.xlane.xlu0 %800  ;;  %v1966_v32 = vpop.eup %1965  ;;  %v874_v35 = vmul.f32 %v1964_v31, %v1960_v17 }
 0xd23   :  { %1969 = vrcp.f32 %v801_v29  ;;  %v1968_v33 = vpop.eup %1967  ;;  %v804_v38 = vmul.f32 %v1966_v32, %v1956_v25  ;;  %v1914_v32 = vld [vmem:[%s2550_s8 + $0xa] ss:$0 sm:$0xff] }
 0xd24   :  { %v873_v42 = vmul.f32 %v1968_v33, %v1958_v12  ;;  %v1846_v12 = vld [vmem:[%s2548_s6 + $0x10] sm:$0xff] }
 0xd26   :  { %v875_v45 = vpack.c.bf16 %v874_v35, %v873_v42 }
 0xd29   :  { %v1970_v34 = vpop.eup %1969 }
 0xd2a   :  { %v805_v39 = vmul.f32 %v1970_v34, %v1962_v19  ;;  %v877_v40 = vpop.permute.xlu1 %876 }
 0xd2b   :  { %v882_v43 = vsel %vm346_vm11, %v877_v40, 0 }
 0xd2c   :  { %v806_v44 = vpack.c.bf16 %v805_v39, %v804_v38  ;;  %891 = vmatpush.bf16.msra.mxu2 %v882_v43  ;;  %v1915_v38 = vld [vmem:[%s2550_s8 + $0xb] ss:$0 sm:$0xff] }
 0xd2e   :  { %1622 = vmatmul.msk.bf16.vlgmr.msra.gmra.mxu3 %vm316_vm12, %v806_v44 }
 0xd2f   :  { %1624 = vmatmul.msk.bf16.vlgmr.msra.gmra.mxu2 %vm316_vm12, %v875_v45 }
 0xdb1   :  { %v824_v28 = vpop.f32.mrf.mxu3 }
 0xdb2   :  { %v893_v46 = vpop.f32.mrf.mxu2 }
 0xdb9   :  { %v826_v53 = vpop.f32.mrf.mxu3 }
 0xdba   :  { %v895_v47 = vpop.f32.mrf.mxu2 }
 0xdbb   :  { %v1897_v48 = vpack.i.bf16 %v895_v47, %v893_v46  ;;  %v1854_v46 = vld [vmem:[%s2549_s7 + $0x70] sm:$0xff]  ;;  %v1853_v47 = vld [vmem:[%s2549_s7 + $0x68] sm:$0xff] }
 0xdbc   :  { %1118 = vmatpush.bf16.msrb.mxu1 %v1854_v46  ;;  %v1864_v46 = vld [vmem:[%s2552_s10 + $0x20] sm:$0xff] }
 0xdbd   :  { %1898 = vrot.lane.b32.xlu0 %v1897_v48, %s2013_s0  ;;  %v1852_v48 = vld [vmem:[%s2549_s7 + $0x60] sm:$0xff] }
 0xdc0   :  { %1119 = vmatpush.bf16.msrb.mxu1 %v1853_v47  ;;  %v1872_v47 = vld [vmem:[%s2552_s10 + $0x60] sm:$0xff] }
 0xdc4   :  { %1120 = vmatpush.bf16.msrb.mxu1 %v1852_v48 }
 0xdc8   :  { %1121 = vmatpush.bf16.msrb.mxu1 %v1851_v49 }
 0xe2f   :  { %v1899_v50 = vpop.permute.xlu0 %1898 }
 0xe30   :  { %v1901_v51 = vunpack.i.h.bf16 %v1899_v50  ;;  %v1900_v52 = vunpack.i.l.bf16 %v1899_v50  ;;  %v1849_v50 = vld [vmem:[%s2549_s7 + $0x48] sm:$0xff] }
 0xe32   :  { %v907_v54 = vsel %vm295_vm10, %v826_v53, %v1901_v51  ;;  %v906_v55 = vsel %vm295_vm10, %v824_v28, %v1900_v52  ;;  %v1850_v28 = vld [vmem:[%s2549_s7 + $0x50] sm:$0xff]  ;;  %v1916_v51 = vld [vmem:[%s2550_s8 + $0xe] ss:$0 sm:$0xff]  ;;  %v1848_v53 = vld [vmem:[%s2549_s7 + $0x40] sm:$0xff] }
 0xe33   :  { %v908_v56 = vpack.c.bf16 %v907_v54, %v906_v55  ;;  %1122 = vmatpush.bf16.msrb.mxu1 %v1850_v28  ;;  %v1863_v28 = vld [vmem:[%s2552_s10 + $0x18] sm:$0xff] }
 0xe35   :  { %1637 = vmatmul.msk.bf16.vlgmr.msrb.gmra.mxu3 %vm197_vm1, %v908_v56 }
 0xe37   :  { %1123 = vmatpush.bf16.msrb.mxu1 %v1849_v50  ;;  %v1871_v50 = vld [vmem:[%s2552_s10 + $0x58] sm:$0xff] }
 0xe3b   :  { %1124 = vmatpush.bf16.msrb.mxu1 %v1848_v53  ;;  %v1862_v53 = vld [vmem:[%s2552_s10 + $0x10] sm:$0xff] }
 0xeb8   :  { %v939_v59 = vpop.f32.mrf.mxu3 }
 0xeb9   :  { %v940_v60 = vadd.f32 %v1913_v57, %v939_v59 }
 0xebb   :  { %v2363_v61 = vadd.f32 %v940_v60, %v2291_v58 }
 0xebd   :  { %v946_v63 = vsel %vm197_vm1, %v2363_v61, 0.0 }
 0xebe   :  { %947 = vadd.xlane.f32.xlu1 %v946_v63 }
 0xec0   :  { %v941_v0 = vpop.f32.mrf.mxu3 }
 0xec1   :  { %v942_v1 = vadd.f32 %v1913_v57, %v941_v0 }
 0xec3   :  { %v945_v2 = vadd.f32 %v942_v1, %v2296_v62  ;;  %v1847_v62 = vld [vmem:[%s2548_s6 + $0x18] sm:$0xff] }
 0xec4   :  { %1024 = vmatpush.bf16.msra.mxu0 %v1847_v62 }
 0xec5   :  { %v949_v37 = vsel %vm201_vm2, %v945_v2, 0.0 }
 0xec6   :  { %950 = vadd.xlane.f32.xlu0 %v949_v37 }
 0xec8   :  { %1025 = vmatpush.bf16.msra.mxu0 %v1846_v12 }
 0xf31   :  { %v948_v3 = vpop.xlane.xlu1 %947 }
 0xf32   :  { %v952_v4 = vmul.f32 %v948_v3, %v2147_v36 }
 0xf34   :  { %v954_v5 = vsub.f32 %v2363_v61, %v952_v4 }
 0xf36   :  { %v956_v6 = vmul.f32 %v954_v5, %v954_v5 }
 0xf38   :  { %v958_v58 = vsel %vm197_vm1, %v956_v6, 0.0 }
 0xf39   :  { %v951_v25 = vpop.xlane.xlu0 %950  ;;  %959 = vadd.xlane.f32.xlu2 %v958_v58 }
 0xf3a   :  { %v953_v41 = vmul.f32 %v951_v25, %v2147_v36 }
 0xf3c   :  { %v955_v7 = vsub.f32 %v945_v2, %v953_v41 }
 0xf3e   :  { %v957_v8 = vmul.f32 %v955_v7, %v955_v7 }
 0xf40   :  { %v961_v9 = vsel %vm201_vm2, %v957_v8, 0.0 }
 0xf41   :  { %962 = vadd.xlane.f32.xlu1 %v961_v9 }
 0xfac   :  { %v960_v10 = vpop.xlane.xlu2 %959 }
 0xfad   :  { %v964_v30 = vmul.f32 %v960_v10, %v2147_v36  ;;  %v1917_v10 = vld [vmem:[%s2550_s8 + $0xf] ss:$0 sm:$0xff] }
 0xfaf   :  { %v966_v11 = vadd.f32 1e-12, %v964_v30 }
 0xfb1   :  { %1971 = vrsqrt.f32 %v966_v11  ;;  %vm974_vm11 = vweird.f32 %v966_v11 }
 0xfb4   :  { %v963_v13 = vpop.xlane.xlu1 %962 }
 0xfb5   :  { %v965_v14 = vmul.f32 %v963_v13, %v2147_v36 }
 0xfb7   :  { %v1972_v15 = vpop.eup %1971  ;;  %v967_v16 = vadd.f32 1e-12, %v965_v14 }
 0xfb8   :  { %v969_v17 = vmul.f32 %v1972_v15, %v966_v11  ;;  %vm975_vm10 = vweird.f32 %v1972_v15 }
 0xfb9   :  { %1973 = vrsqrt.f32 %v967_v16  ;;  %vm976_vm12 = vmor %vm974_vm11, %vm975_vm10  ;;  %vm984_vm0 = vweird.f32 %v967_v16 }
 0xfba   :  { %v970_v18 = vmul.f32 %v1972_v15, %v969_v17 }
 0xfbc   :  { %v971_v19 = vmul.f32 0.5, %v970_v18 }
 0xfbe   :  { %v972_v20 = vsub.f32 1.5, %v971_v19 }
 0xfbf   :  { %v1974_v21 = vpop.eup %1973 }
 0xfc0   :  { %v973_v23 = vmul.f32 %v1972_v15, %v972_v20  ;;  %v979_v24 = vmul.f32 %v1974_v21, %v967_v16  ;;  %vm985_vm13 = vweird.f32 %v1974_v21 }
 0xfc1   :  { %vm986_vm3 = vmor %vm984_vm0, %vm985_vm13 }
 0xfc2   :  { %v980_v26 = vmul.f32 %v1974_v21, %v979_v24  ;;  %v977_v27 = vsel %vm976_vm12, %v1972_v15, %v973_v23  ;;  %v2424_v15 = vld [vmem:[%s2554_s12] ss:$0 sm:$0xff]  ;;  %v1858_v23 = vld [vmem:[%s2551_s9 + $0x14] sm:$0xf] }
 0xfc3   :  { %v988_v33 = vmul.f32 %v977_v27, %v954_v5  ;;  %1161 = vrot.lane.b32.xlu2 %v2424_v15, %s2009_s18 }
 0xfc4   :  { %v981_v29 = vmul.f32 0.5, %v980_v26  ;;  %v1712_v26 = vld [vmem:[%s2551_s9 + $0x18] sm:$0xf0] }
 0xfc5   :  { %v991_v39 = vmul.f32 %v1914_v32, %v988_v33  ;;  %v1715_v27 = vor.u32 %v1858_v23, %v1712_v26 }
 0xfc6   :  { %v982_v31 = vsub.f32 1.5, %v981_v29  ;;  %v1702_v29 = vld [vmem:[%s2551_s9] sm:$0xf] }
 0xfc7   :  { %v994_v43 = vadd.f32 %v1915_v38, %v991_v39  ;;  %1217 = vmatpush.bf16.msra.mxu3 %v1715_v27  ;;  %v1875_v39 = vld [vmem:[%s2552_s10 + $0x78] sm:$0xff] }
 0xfc8   :  { %v983_v34 = vmul.f32 %v1974_v21, %v982_v31  ;;  %v1857_v31 = vld [vmem:[%s2551_s9 + $0x4] sm:$0xf0] }
 0xfc9   :  { %v1703_v33 = vor.u32 %v1857_v31, %v1702_v29 }
 0xfca   :  { %v987_v35 = vsel %vm986_vm3, %v1974_v21, %v983_v34  ;;  %v1859_v21 = vld [vmem:[%s2551_s9 + $0x14] sm:$0xf0]  ;;  %v1704_v34 = vld [vmem:[%s2551_s9 + $0x8] sm:$0xf0] }
 0xfcb   :  { %v989_v40 = vmul.f32 %v987_v35, %v955_v7 }
 0xfcd   :  { %v992_v42 = vmul.f32 %v1914_v32, %v989_v40  ;;  %v1856_v32 = vld [vmem:[%s2551_s9 + $0x4] sm:$0xf] }
 0xfce   :  { %v1707_v35 = vor.u32 %v1856_v32, %v1704_v34 }
 0xfcf   :  { %v995_v44 = vadd.f32 %v1915_v38, %v992_v42  ;;  %v1867_v38 = vld [vmem:[%s2552_s10 + $0x38] sm:$0xff] }
 0xfd0   :  { %1218 = vmatpush.bf16.msra.mxu3 %v1707_v35  ;;  %1357 = vmatpush.bf16.msrb.mxu0 %v1867_v38 }
 0xfd1   :  { %v996_v45 = vpack.c.bf16 %v995_v44, %v994_v43  ;;  %v1866_v43 = vld [vmem:[%s2552_s10 + $0x30] sm:$0xff] }
 0xfd2   :  { %v1874_v44 = vld [vmem:[%s2552_s10 + $0x70] sm:$0xff] }
 0xfd3   :  { %1650 = vmatmul.msk.bf16.vlgmr.msra.gmra.mxu0 %vm197_vm1, %v996_v45 }
 0xfd4   :  { %1358 = vmatpush.bf16.msrb.mxu0 %v1866_v43 }
 0xfd8   :  { %1359 = vmatpush.bf16.msrb.mxu0 %v1865_v22 }
 0xfdc   :  { %1360 = vmatpush.bf16.msrb.mxu0 %v1864_v46 }
 0xfe0   :  { %1361 = vmatpush.bf16.msrb.mxu0 %v1863_v28 }
 0xfe4   :  { %1362 = vmatpush.bf16.msrb.mxu0 %v1862_v53 }
0x1050   :  { %v1027_v52 = vpop.f32.mrf.mxu0 }
0x1051   :  { %v1028_v54 = vadd.f32 %v1916_v51, %v1027_v52 }
0x1053   :  { %v1032_v55 = vmul.f32 %v1028_v54, %v1028_v54 }
0x1055   :  { %v1034_v56 = vmul.f32 %v1032_v55, %v1028_v54 }
0x1057   :  { %v1036_v57 = vmul.f32 0.044715, %v1034_v56 }
0x1058   :  { %v1029_v59 = vpop.f32.mrf.mxu0 }
0x1059   :  { %v1038_v60 = vadd.f32 %v1036_v57, %v1028_v54  ;;  %v1030_v63 = vadd.f32 %v1916_v51, %v1029_v59 }
0x105b   :  { %v1040_v0 = vmul.f32 0.7978846, %v1038_v60  ;;  %v1033_v1 = vmul.f32 %v1030_v63, %v1030_v63  ;;  %v1162_v60 = vpop.permute.xlu2 %1161 }
0x105d   :  { %v1035_v2 = vmul.f32 %v1033_v1, %v1030_v63  ;;  %1975 = vtanh.f32 %v1040_v0 }
0x105f   :  { %v1037_v37 = vmul.f32 0.044715, %v1035_v2  ;;  %v1861_v2 = vld [vmem:[%s2552_s10 + $0x8] sm:$0xff] }
0x1060   :  { %1363 = vmatpush.bf16.msrb.mxu0 %v1861_v2 }
0x1061   :  { %v1039_v3 = vadd.f32 %v1037_v37, %v1030_v63  ;;  %v1869_v37 = vld [vmem:[%s2552_s10 + $0x48] sm:$0xff] }
0x1063   :  { %v1041_v4 = vmul.f32 0.7978846, %v1039_v3  ;;  %v1976_v5 = vpop.eup %1975  ;;  %v1860_v3 = vld [vmem:[%s2552_s10] sm:$0xff] }
0x1064   :  { %v1044_v6 = vadd.f32 1.0, %v1976_v5  ;;  %1364 = vmatpush.bf16.msrb.mxu0 %v1860_v3  ;;  %v1883_v5 = vld [vmem:[%s2553_s11 + $0x38] sm:$0xff] }
0x1065   :  { %1977 = vtanh.f32 %v1041_v4  ;;  %v1868_v4 = vld [vmem:[%s2552_s10 + $0x40] sm:$0xff]  ;;  %1450 = vmatpush.bf16.msrb.mxu3 %v1883_v5 }
0x1066   :  { %v1046_v25 = vmul.f32 0.5, %v1044_v6  ;;  %v1882_v6 = vld [vmem:[%s2553_s11 + $0x30] sm:$0xff] }
0x1068   :  { %v1048_v8 = vmul.f32 %v1046_v25, %v1028_v54  ;;  %v1870_v54 = vld [vmem:[%s2552_s10 + $0x50] sm:$0xff]  ;;  %v1880_v25 = vld [vmem:[%s2553_s11 + $0x20] sm:$0xff] }
0x1069   :  { %1451 = vmatpush.bf16.msrb.mxu3 %v1882_v6 }
0x106b   :  { %v1978_v58 = vpop.eup %1977 }
0x106c   :  { %v1045_v41 = vadd.f32 1.0, %v1978_v58  ;;  %v1881_v58 = vld [vmem:[%s2553_s11 + $0x28] sm:$0xff] }
0x106d   :  { %1452 = vmatpush.bf16.msrb.mxu3 %v1881_v58 }
0x106e   :  { %v1047_v7 = vmul.f32 0.5, %v1045_v41  ;;  %v1879_v41 = vld [vmem:[%s2553_s11 + $0x18] sm:$0xff] }
0x1070   :  { %v1049_v9 = vmul.f32 %v1047_v7, %v1030_v63  ;;  %v1699_v7 = vld [vmem:[%s2554_s12 + $0x1] ss:$4 sm:$0x3] }
0x1071   :  { %1453 = vmatpush.bf16.msrb.mxu3 %v1880_v25 }
0x1072   :  { %v1050_v62 = vpack.c.bf16 %v1049_v9, %v1048_v8  ;;  %v1171_v8 = vperm.slane %v1699_v7, 0  ;;  %v1172_v9 = vperm.slane %v1699_v7, 1 }
0x1074   :  { %1125 = vmatmul.bf16.vlgmr.msrb.gmra.mxu1 %v1050_v62 }
0x1075   :  { %1454 = vmatpush.bf16.msrb.mxu3 %v1879_v41 }
0x10f1   :  { %v1126_v30 = vpop.f32.mrf.mxu1 }
0x10f2   :  { %v1127_v11 = vadd.f32 %v1917_v10, %v1126_v30 }
0x10f4   :  { %v1130_v12 = vadd.f32 %v1127_v11, %v2363_v61  ;;  %v1710_v61 = vld [vmem:[%s2551_s9 + $0x10] sm:$0xf] }
0x10f5   :  { %v1711_v24 = vor.u32 %v1859_v21, %v1710_v61  ;;  %v1919_v21 = vld [vmem:[%s2554_s12 + $0x2] ss:$0 sm:$0xff] }
0x10f6   :  { %v1136_v13 = vsel %vm201_vm2, %v1130_v12, 0.0 }
0x10f7   :  { %1137 = vadd.xlane.f32.xlu1 %v1136_v13  ;;  %1204 = vmatpush.bf16.msrb.mxu2 %v1711_v24 }
0x10f9   :  { %v1128_v14 = vpop.f32.mrf.mxu1 }
0x10fb   :  { %1205 = vmatpush.bf16.msrb.mxu2 %v1703_v33  ;;  %v1920_v33 = vld [vmem:[%s2554_s12 + $0x3] ss:$0 sm:$0xff] }
0x10ff   :  { %1370 = vmatpush.bf16.msra.mxu2 %v1875_v39 }
0x1103   :  { %1371 = vmatpush.bf16.msra.mxu2 %v1874_v44 }
0x116a   :  { %v1138_v16 = vpop.xlane.xlu1 %1137 }
0x116b   :  { %v1139_v17 = vmul.f32 %v1138_v16, %v2147_v36 }
0x116d   :  { %v1140_v18 = vsub.f32 %v1130_v12, %v1139_v17 }
0x116f   :  { %v1141_v19 = vmul.f32 %v1140_v18, %v1140_v18 }
0x1171   :  { %v1142_v20 = vsel %vm201_vm2, %v1141_v19, 0.0  ;;  %v1877_v19 = vld [vmem:[%s2553_s11 + $0x8] sm:$0xff] }
0x1172   :  { %1143 = vadd.xlane.f32.xlu0 %v1142_v20  ;;  %v1876_v20 = vld [vmem:[%s2553_s11] sm:$0xff] }
0x11e5   :  { %v1144_v40 = vpop.xlane.xlu0 %1143 }
0x11e6   :  { %v1145_v42 = vmul.f32 %v1144_v40, %v2147_v36  ;;  %v1873_v36 = vld [vmem:[%s2552_s10 + $0x68] sm:$0xff] }
0x11e7   :  { %1372 = vmatpush.bf16.msra.mxu2 %v1873_v36 }
0x11e8   :  { %v1146_v45 = vadd.f32 1e-12, %v1145_v42 }
0x11ea   :  { %1979 = vrsqrt.f32 %v1146_v45  ;;  %vm1153_vm4 = vweird.f32 %v1146_v45 }
0x11eb   :  { %1373 = vmatpush.bf16.msra.mxu2 %v1872_v47 }
0x11ef   :  { %1374 = vmatpush.bf16.msra.mxu2 %v1871_v50 }
0x11f0   :  { %v1980_v48 = vpop.eup %1979 }
0x11f1   :  { %v1148_v49 = vmul.f32 %v1980_v48, %v1146_v45  ;;  %vm1154_vm2 = vweird.f32 %v1980_v48 }
0x11f2   :  { %vm1155_vm5 = vmor %vm1153_vm4, %vm1154_vm2 }
0x11f3   :  { %v1149_v51 = vmul.f32 %v1980_v48, %v1148_v49  ;;  %1375 = vmatpush.bf16.msra.mxu2 %v1870_v54 }
0x11f5   :  { %v1150_v52 = vmul.f32 0.5, %v1149_v51 }
0x11f7   :  { %v1151_v55 = vsub.f32 1.5, %v1150_v52  ;;  %1376 = vmatpush.bf16.msra.mxu2 %v1869_v37 }
0x11f9   :  { %v1152_v56 = vmul.f32 %v1980_v48, %v1151_v55 }
0x11fb   :  { %v1156_v57 = vsel %vm1155_vm5, %v1980_v48, %v1152_v56  ;;  %1377 = vmatpush.bf16.msra.mxu2 %v1868_v4 }
0x11fc   :  { %v1157_v59 = vmul.f32 %v1156_v57, %v1140_v18  ;;  %v1878_v18 = vld [vmem:[%s2553_s11 + $0x10] sm:$0xff]  ;;  %s1469_s11 = sshll.u32 %s2014_s23, 4  ;;  %s1470_s11 = int_to_ptr.vmem [resolvable:$true] %s1469_s11 }
0x11fd   :  { %1455 = vmatpush.bf16.msrb.mxu3 %v1878_v18 }
0x11fe   :  { %v1159_v63 = vmul.f32 %v2424_v15, %v1157_v59 }
0x1200   :  { %v1164_v0 = vadd.f32 %v1162_v60, %v1159_v63 }
0x1201   :  { %1456 = vmatpush.bf16.msrb.mxu3 %v1877_v19 }
0x1202   :  { %v1165_v1 = vpack.c.bf16 %v1164_v0, %v1164_v0 }
0x1204   :  { %1716 = vmatmul.msk.bf16.vlgmr.msrb.gmra.mxu2 %vm197_vm1, %v1165_v1  ;;  %1717 = vmatmul.msk.bf16.vlgmr.msra.gmra.mxu3 %vm197_vm1, %v1165_v1 }
0x1205   :  { %1457 = vmatpush.bf16.msrb.mxu3 %v1876_v20 }
0x1287   :  { %v1207_v62 = vpop.f32.mrf.mxu2  ;;  %v1220_v10 = vpop.f32.mrf.mxu3 }
0x1288   :  { %v1208_v30 = vadd.f32 %v1207_v62, %v1171_v8  ;;  %v1221_v11 = vadd.f32 %v1220_v10, %v1172_v9 }
0x128a   :  { %v1224_v12 = vmax.f32 %v1208_v30, 0.0  ;;  %v1225_v13 = vmax.f32 %v1221_v11, 0.0 }
0x128c   :  { %v1226_v14 = vpack.c.bf16 %v1224_v12, %v1224_v12  ;;  %v1227_v15 = vpack.c.bf16 %v1225_v13, %v1225_v13 }
0x128e   :  { %1365 = vmatmul.bf16.vlgmr.msrb.gmra.mxu0 %v1226_v14  ;;  %1378 = vmatmul.bf16.vlgmr.msra.gmra.mxu2 %v1227_v15 }
0x128f   :  { %v1209_v16 = vpop.f32.mrf.mxu2  ;;  %v1222_v17 = vpop.f32.mrf.mxu3 }
0x130b   :  { %v1366_v61 = vpop.f32.mrf.mxu0 }
0x130c   :  { %v1367_v23 = vadd.f32 %v1919_v21, %v1366_v61 }
0x1311   :  { %v1379_v24 = vpop.f32.mrf.mxu2 }
0x1312   :  { %v1380_v26 = vadd.f32 %v1379_v24, %v1367_v23 }
0x1313   :  { %v1368_v27 = vpop.f32.mrf.mxu0 }
0x1314   :  { %v1383_v29 = vmax.f32 %v1380_v26, 0.0 }
0x1316   :  { %v1384_v31 = vpack.c.bf16 %v1383_v29, %v1383_v29 }
0x1318   :  { %1458 = vmatmul.bf16.vlgmr.msrb.gmra.mxu3 %v1384_v31 }
0x1319   :  { %v1381_v32 = vpop.f32.mrf.mxu2 }
0x139b   :  { %v1459_v34 = vpop.f32.mrf.mxu3 }
0x139c   :  { %v1460_v35 = vadd.f32 %v1920_v33, %v1459_v34 }
0x139e   :  { %1463 = vst [vmem:[#allocation2] sm:$0x3] %v1460_v35 }
0x139f   :  { %1474 = dma.vmem_to_hbm [thread:$0]  %s1470_s11, 32, %s1472_s22, [#allocation3]  }
0x13a3   :  { %v1461_v38 = vpop.f32.mrf.mxu3 }
0x13a4   :  { %2005 = dma.done.wait [#allocation3], 32  }
0x13a5   :  { %2006 = vsyncadd [#allocation3], 4294967264 }
0x13a6   :  { %1479 = vsyncpa [#allocation3], 1 }

</bundles_post_ra>
